<compile_context>
chip_gen: v7x
topology: tpu7x:2x2x1
jax: 0.10.0
libtpu: 0.0.40
codegen_flags: <defaults>
</compile_context>

<pallas_src>
import jax
import jax.numpy as jnp
from jax import lax
from jax.experimental import pallas as pl
from jax.experimental.pallas import tpu as pltpu


# --------------------------------------------------------------------------- #
# Kernel                                                                      #
# --------------------------------------------------------------------------- #
def bottleneck_kernel(x_top_ref, x_ref, x_bot_ref,
                      w1_ref, b1_ref, w2_ref, b2_ref, w3_ref, b3_ref,
                      out_ref, pad_ref):
    _, TH, W, Cin = x_ref.shape
    Cmid = w1_ref.shape[1]
    Cout = w3_ref.shape[1]
    h = pl.program_id(1)
    n_h = pl.num_programs(1)

    # ---- gather TH+2 rows of x: tile + 1-row halos from neighbouring tiles ----
    x_all = jnp.concatenate([x_top_ref[...], x_ref[...], x_bot_ref[...]], axis=1)
    x_all = x_all.reshape((TH + 2) * W, Cin)                      # bf16

    # ---- conv1 (1x1) + bn1 + relu (BN scale already folded into w1) ----------
    # one (TH+2)*W x Cin matmul covers the tile and both halo rows
    y1 = jnp.dot(x_all, w1_ref[...], preferred_element_type=jnp.float32)
    y1 = jnp.maximum(y1 + b1_ref[...], 0.0).astype(jnp.bfloat16)

    # ---- build zero-padded slab for the 3x3 conv (only halo strips zeroed) ----
    pad_ref[:, 0:1, :] = jnp.zeros((TH + 2, 1, Cmid), jnp.bfloat16)
    pad_ref[:, W + 1:W + 2, :] = jnp.zeros((TH + 2, 1, Cmid), jnp.bfloat16)
    pad_ref[:, 1:W + 1, :] = y1.reshape(TH + 2, W, Cmid)

    # at the true image border the halo row is conv2's zero padding
    @pl.when(h == 0)
    def _():
        pad_ref[0:1, :, :] = jnp.zeros((1, W + 2, Cmid), jnp.bfloat16)

    @pl.when(h == n_h - 1)
    def _():
        pad_ref[TH + 1:TH + 2, :, :] = jnp.zeros((1, W + 2, Cmid), jnp.bfloat16)

    # ---- conv2 (3x3, stride=1, padding=1) + bn2 + relu as ONE im2col matmul ---
    cols = [pad_ref[dy:dy + TH, dx:dx + W, :]
            for dy in range(3) for dx in range(3)]                 # (dy,dx,ci) order
    patches = jnp.concatenate(cols, axis=-1).reshape(TH * W, 9 * Cmid)
    y2 = jnp.dot(patches, w2_ref[...], preferred_element_type=jnp.float32)
    y2 = jnp.maximum(y2 + b2_ref[...], 0.0).astype(jnp.bfloat16)

    # ---- conv3 (1x1) + bn3, residual add (identity re-read from VMEM), relu ---
    y3 = jnp.dot(y2, w3_ref[...], preferred_element_type=jnp.float32)
    y3 = y3 + b3_ref[...]
    identity = x_ref[...].reshape(TH * W, Cout).astype(jnp.float32)
    out = jnp.maximum(y3 + identity, 0.0)
    out_ref[...] = out.reshape(1, TH, W, Cout).astype(out_ref.dtype)


# --------------------------------------------------------------------------- #
# Wrapper                                                                     #
# --------------------------------------------------------------------------- #
def _pick_tile_h(H, W, Cin, Cmid, Cout, budget_bytes=8 * 1024 * 1024):
    """Largest H-tile that divides H and keeps the per-step working set small
    (double-buffered x/out tiles + padded slab + im2col patches)."""
    best = 1
    for th in range(1, H + 1):
        if H % th:
            continue
        xb = 2 * (th + 2) * W * Cin * 2          # x tile + halos (bf16, 2 buffers)
        ob = 2 * th * W * Cout * 2               # out tile (bf16, 2 buffers)
        inter = ((th + 2) * (W + 2) * Cmid * 2   # padded slab (bf16)
                 + th * W * 9 * Cmid * 2         # im2col patches (bf16)
                 + th * W * Cout * 4)            # conv3 accumulator (f32)
        if xb + ob + inter <= budget_bytes:
            best = th
    return best


def bottleneck_pallas(x, w1, b1, w2, b2, w3, b3, *,
                      tile_h=None, vmem_limit_bytes=32 * 1024 * 1024):
    """x: (N,H,W,Cin) ; w1:(Cin,Cmid) ; w2:(3,3,Cmid,Cmid) HWIO ; w3:(Cmid,Cout);
    b*: (1,C) f32 biases (BN folded).  Weights/activations are cast to bf16.
    Output is bf16 (same dtype policy as the PyTorch forward on bf16 inputs)."""
    N, H, W, Cin = x.shape
    Cmid = w1.shape[1]
    Cout = w3.shape[1]
    assert Cin == Cout, "identity path requires in_channels == out_channels*expansion"

    x = x.astype(jnp.bfloat16)
    w1 = w1.astype(jnp.bfloat16)
    w3 = w3.astype(jnp.bfloat16)
    w2m = w2.astype(jnp.bfloat16).reshape(9 * Cmid, Cmid)   # im2col weight layout
    b1 = b1.astype(jnp.float32)
    b2 = b2.astype(jnp.float32)
    b3 = b3.astype(jnp.float32)

    if tile_h is None:
        tile_h = _pick_tile_h(H, W, Cin, Cmid, Cout)
    assert H % tile_h == 0, "tile_h must divide H"
    n_h = H // tile_h
    TH = tile_h

    def center_map(n, h):
        return (n, h, 0, 0)

    def top_map(n, h):                       # row just above the tile (clamped)
        return (n, jnp.maximum(h * TH - 1, 0), 0, 0)

    def bot_map(n, h):                       # row just below the tile (clamped)
        return (n, jnp.minimum((h + 1) * TH, H - 1), 0, 0)

    def full_spec(arr):
        return pl.BlockSpec(arr.shape, lambda n, h: (0, 0))

    flops = 2 * N * H * W * (Cin * Cmid + 9 * Cmid * Cmid + Cmid * Cout)
    nbytes = lambda a: a.size * a.dtype.itemsize
    bytes_accessed = (nbytes(x) + 2 * N * n_h * W * Cin * 2      # x + halo rows
                      + N * H * W * Cout * 2                     # output (bf16)
                      + nbytes(w1) + nbytes(w2m) + nbytes(w3)
                      + nbytes(b1) + nbytes(b2) + nbytes(b3))

    return pl.pallas_call(
        bottleneck_kernel,
        out_shape=jax.ShapeDtypeStruct((N, H, W, Cout), jnp.bfloat16),
        grid_spec=pltpu.PrefetchScalarGridSpec(
            num_scalar_prefetch=0,
            grid=(N, n_h),
            in_specs=[
                pl.BlockSpec((1, 1, W, Cin), top_map),      # top halo row of x
                pl.BlockSpec((1, TH, W, Cin), center_map),  # x tile
                pl.BlockSpec((1, 1, W, Cin), bot_map),      # bottom halo row of x
                full_spec(w1), full_spec(b1),
                full_spec(w2m), full_spec(b2),
                full_spec(w3), full_spec(b3),
            ],
            out_specs=pl.BlockSpec((1, TH, W, Cout), center_map),
            scratch_shapes=[pltpu.VMEM((TH + 2, W + 2, Cmid), jnp.bfloat16)],
        ),
        compiler_params=pltpu.CompilerParams(
            dimension_semantics=("parallel", "parallel"),
            vmem_limit_bytes=vmem_limit_bytes),
        cost_estimate=pl.CostEstimate(flops=flops, transcendentals=0,
                                      bytes_accessed=bytes_accessed),
    )(x, x, x, w1, b1, w2m, b2, w3, b3)


# --------------------------------------------------------------------------- #
# Host-side BN folding + pure-JAX reference                                   #
# --------------------------------------------------------------------------- #
def fold_bn_into_conv(w, gamma, beta, mean, var, eps=1e-5):
    """Fold eval-mode BatchNorm into the preceding conv (out-channels on last
    axis of w).  Returns (bf16 folded weight, (1,C) f32 bias)."""
    scale = gamma / jnp.sqrt(var + eps)
    bias = beta - mean * scale
    return (w * scale).astype(jnp.bfloat16), bias[None, :].astype(jnp.float32)


def bottleneck_reference(x, w1, b1, w2_hwio, b2, w3, b3):
    """Pure-JAX NHWC reference mirroring the kernel's bf16-matmul / f32-accumulate
    policy (weights already BN-folded).  Returns f32."""
    f32 = jnp.float32
    y = jnp.einsum('nhwc,co->nhwo', x, w1, preferred_element_type=f32)
    y = jnp.maximum(y + b1, 0.0).astype(jnp.bfloat16)
    y = lax.conv_general_dilated(y, w2_hwio, window_strides=(1, 1), padding='SAME',
                                 dimension_numbers=('NHWC', 'HWIO', 'NHWC'),
                                 preferred_element_type=f32)
    y = jnp.maximum(y + b2, 0.0).astype(jnp.bfloat16)
    y = jnp.einsum('nhwc,co->nhwo', y, w3, preferred_element_type=f32)
    return jnp.maximum(y + b3 + x.astype(f32), 0.0)


# --------------------------------------------------------------------------- #
# Test                                                                        #
# --------------------------------------------------------------------------- #
if __name__ == "__main__":
    # Bottleneck(in_channels=128, out_channels=32, stride=1, downsample=None)
    # expansion = 4 -> output channels = 128 == in_channels (identity path OK).
    N, H, W = 2, 16, 16
    Cmid = 32
    Cin = Cout = Cmid * 4   # 128 -> lane-dense output stores

    key = jax.random.PRNGKey(0)
    ks = jax.random.split(key, 8)

    x = jax.random.normal(ks[0], (N, H, W, Cin), jnp.float32).astype(jnp.bfloat16)
    w1 = jax.random.normal(ks[1], (Cin, Cmid), jnp.float32) * 0.1          # 1x1
    w2 = jax.random.normal(ks[2], (3, 3, Cmid, Cmid), jnp.float32) * 0.1   # 3x3 HWIO
    w3 = jax.random.normal(ks[3], (Cmid, Cout), jnp.float32) * 0.1         # 1x1

    def bn_params(k, c):
        k1, k2, k3, k4 = jax.random.split(k, 4)
        gamma = 1.0 + 0.1 * jax.random.normal(k1, (c,), jnp.float32)
        beta = 0.1 * jax.random.normal(k2, (c,), jnp.float32)
        mean = 0.1 * jax.random.normal(k3, (c,), jnp.float32)
        var = jnp.abs(jax.random.normal(k4, (c,), jnp.float32)) + 0.5
        return gamma, beta, mean, var

    w1f, b1 = fold_bn_into_conv(w1, *bn_params(ks[4], Cmid))
    w2f, b2 = fold_bn_into_conv(w2, *bn_params(ks[5], Cmid))   # still HWIO
    w3f, b3 = fold_bn_into_conv(w3, *bn_params(ks[6], Cout))

    ref = bottleneck_reference(x, w1f, b1, w2f, b2, w3f, b3)
    # kernel stores bf16 -> compare against the bf16-quantized reference
    ref_q = ref.astype(jnp.bfloat16).astype(jnp.float32)

    # tile_h=4 -> grid (2, 4): exercises border tiles and interior halo exchange.
    out = bottleneck_pallas(x, w1f, b1, w2f, b2, w3f, b3, tile_h=4)
    out = jax.block_until_ready(out)
    assert out.shape == (N, H, W, Cout)
    out_f = out.astype(jnp.float32)
    err = float(jnp.max(jnp.abs(out_f - ref_q)))
    assert jnp.allclose(out_f, ref_q, atol=3e-2, rtol=3e-2), f"max abs err = {err}"

    # default (auto) tile: whole-H tile, exercises the n_h == 1 border path.
    out2 = bottleneck_pallas(x, w1f, b1, w2f, b2, w3f, b3)
    out2 = jax.block_until_ready(out2)
    out2_f = out2.astype(jnp.float32)
    err2 = float(jnp.max(jnp.abs(out2_f - ref_q)))
    assert jnp.allclose(out2_f, ref_q, atol=3e-2, rtol=3e-2), f"max abs err = {err2}"

    print("KERNEL_OK")
</pallas_src>

<mosaic_0001>
module attributes {stable_mosaic.version = 11 : i64} {
  func.func @bottleneck_kernel(%arg0: i32, %arg1: i32, %arg2: memref<1x1x16x128xbf16, #tpu.memory_space<vmem>>, %arg3: memref<1x4x16x128xbf16, #tpu.memory_space<vmem>>, %arg4: memref<1x1x16x128xbf16, #tpu.memory_space<vmem>>, %arg5: memref<128x32xbf16, #tpu.memory_space<vmem>>, %arg6: memref<1x32xf32, #tpu.memory_space<vmem>>, %arg7: memref<288x32xbf16, #tpu.memory_space<vmem>>, %arg8: memref<1x32xf32, #tpu.memory_space<vmem>>, %arg9: memref<32x128xbf16, #tpu.memory_space<vmem>>, %arg10: memref<1x128xf32, #tpu.memory_space<vmem>>, %arg11: memref<1x4x16x128xbf16, #tpu.memory_space<vmem>>, %arg12: memref<6x18x32xbf16, #tpu.memory_space<vmem>>) attributes {dimension_semantics = [#tpu.dimension_semantics<parallel>, #tpu.dimension_semantics<parallel>], iteration_bounds = array<i64: 2, 4>, scalar_prefetch = 0 : i64, scratch_operands = 1 : i64, tpu.core_type = #tpu.core_type<tc>, window_params = [{transform_indices = @transform_0, window_bounds = array<i64: 1, 1, 16, 128>}, {transform_indices = @transform_1, window_bounds = array<i64: 1, 4, 16, 128>}, {transform_indices = @transform_2, window_bounds = array<i64: 1, 1, 16, 128>}, {pipeline_mode = #tpu.pipeline_mode<synchronous>, transform_indices = @transform_3, window_bounds = array<i64: 128, 32>}, {pipeline_mode = #tpu.pipeline_mode<synchronous>, transform_indices = @transform_4, window_bounds = array<i64: 1, 32>}, {pipeline_mode = #tpu.pipeline_mode<synchronous>, transform_indices = @transform_5, window_bounds = array<i64: 288, 32>}, {pipeline_mode = #tpu.pipeline_mode<synchronous>, transform_indices = @transform_6, window_bounds = array<i64: 1, 32>}, {pipeline_mode = #tpu.pipeline_mode<synchronous>, transform_indices = @transform_7, window_bounds = array<i64: 32, 128>}, {pipeline_mode = #tpu.pipeline_mode<synchronous>, transform_indices = @transform_8, window_bounds = array<i64: 1, 128>}, {transform_indices = @transform_9, window_bounds = array<i64: 1, 4, 16, 128>}]} {
    %c0 = arith.constant 0 : index
    %c0_0 = arith.constant 0 : index
    %c0_1 = arith.constant 0 : index
    %c0_2 = arith.constant 0 : index
    %0 = vector.load %arg2[%c0, %c0_0, %c0_1, %c0_2] : memref<1x1x16x128xbf16, #tpu.memory_space<vmem>>, vector<1x1x16x128xbf16>
    %c0_3 = arith.constant 0 : index
    %c0_4 = arith.constant 0 : index
    %c0_5 = arith.constant 0 : index
    %c0_6 = arith.constant 0 : index
    %1 = vector.load %arg3[%c0_3, %c0_4, %c0_5, %c0_6] : memref<1x4x16x128xbf16, #tpu.memory_space<vmem>>, vector<1x4x16x128xbf16>
    %c0_7 = arith.constant 0 : index
    %c0_8 = arith.constant 0 : index
    %c0_9 = arith.constant 0 : index
    %c0_10 = arith.constant 0 : index
    %2 = vector.load %arg4[%c0_7, %c0_8, %c0_9, %c0_10] : memref<1x1x16x128xbf16, #tpu.memory_space<vmem>>, vector<1x1x16x128xbf16>
    %3 = tpu.concatenate %0, %1, %2 in 1 : vector<1x1x16x128xbf16>, vector<1x4x16x128xbf16>, vector<1x1x16x128xbf16> -> vector<1x6x16x128xbf16>
    %4 = vector.shape_cast %3 : vector<1x6x16x128xbf16> to vector<96x128xbf16>
    %c0_11 = arith.constant 0 : index
    %c0_12 = arith.constant 0 : index
    %5 = vector.load %arg5[%c0_11, %c0_12] : memref<128x32xbf16, #tpu.memory_space<vmem>>, vector<128x32xbf16>
    %cst = arith.constant dense<0.000000e+00> : vector<96x32xf32>
    %6 = tpu.matmul %4, %5, %cst {dimension_numbers = #tpu.dot_dimension_numbers<[1], [0], [0], [1], [0, 0, 1, 1], [], []>} : vector<96x128xbf16>, vector<128x32xbf16>, vector<96x32xf32> -> vector<96x32xf32>
    %c0_13 = arith.constant 0 : index
    %c0_14 = arith.constant 0 : index
    %7 = vector.load %arg6[%c0_13, %c0_14] : memref<1x32xf32, #tpu.memory_space<vmem>>, vector<1x32xf32>
    %8 = vector.broadcast %7 : vector<1x32xf32> to vector<96x32xf32>
    %9 = arith.addf %6, %8 : vector<96x32xf32>
    %cst_15 = arith.constant 0.000000e+00 : f32
    %10 = vector.broadcast %cst_15 : f32 to vector<96x32xf32>
    %11 = arith.maximumf %9, %10 : vector<96x32xf32>
    %12 = arith.truncf %11 : vector<96x32xf32> to vector<96x32xbf16>
    %cst_16 = arith.constant 0.000000e+00 : bf16
    %13 = vector.broadcast %cst_16 : bf16 to vector<6x1x32xbf16>
    %c0_17 = arith.constant 0 : index
    %c0_18 = arith.constant 0 : index
    %c0_19 = arith.constant 0 : index
    %14 = vector.load %arg12[%c0_17, %c0_18, %c0_19] : memref<6x18x32xbf16, #tpu.memory_space<vmem>>, vector<6x1x32xbf16>
    tpu.vector_store %arg12[%c0_17, %c0_18, %c0_19], %13 {strides = array<i32>} : memref<6x18x32xbf16, #tpu.memory_space<vmem>>, vector<6x1x32xbf16>,
    %cst_20 = arith.constant 0.000000e+00 : bf16
    %15 = vector.broadcast %cst_20 : bf16 to vector<6x1x32xbf16>
    %c0_21 = arith.constant 0 : index
    %c17 = arith.constant 17 : index
    %c0_22 = arith.constant 0 : index
    %16 = vector.load %arg12[%c0_21, %c17, %c0_22] : memref<6x18x32xbf16, #tpu.memory_space<vmem>>, vector<6x1x32xbf16>
    tpu.vector_store %arg12[%c0_21, %c17, %c0_22], %15 {strides = array<i32>} : memref<6x18x32xbf16, #tpu.memory_space<vmem>>, vector<6x1x32xbf16>,
    %17 = vector.shape_cast %12 : vector<96x32xbf16> to vector<6x16x32xbf16>
    %c0_23 = arith.constant 0 : index
    %c1 = arith.constant 1 : index
    %c0_24 = arith.constant 0 : index
    %18 = vector.load %arg12[%c0_23, %c1, %c0_24] : memref<6x18x32xbf16, #tpu.memory_space<vmem>>, vector<6x16x32xbf16>
    tpu.vector_store %arg12[%c0_23, %c1, %c0_24], %17 {strides = array<i32>} : memref<6x18x32xbf16, #tpu.memory_space<vmem>>, vector<6x16x32xbf16>,
    %c0_i32 = arith.constant 0 : i32
    %19 = arith.cmpi eq, %arg1, %c0_i32 : i32
    %20 = arith.extui %19 : i1 to i32
    %c0_i32_25 = arith.constant 0 : i32
    %21 = arith.cmpi ne, %20, %c0_i32_25 : i32
    scf.if %21 {
      %cst_73 = arith.constant 0.000000e+00 : bf16
      %58 = vector.broadcast %cst_73 : bf16 to vector<1x18x32xbf16>
      %c0_74 = arith.constant 0 : index
      %c0_75 = arith.constant 0 : index
      %c0_76 = arith.constant 0 : index
      %59 = vector.load %arg12[%c0_74, %c0_75, %c0_76] : memref<6x18x32xbf16, #tpu.memory_space<vmem>>, vector<1x18x32xbf16>
      tpu.vector_store %arg12[%c0_74, %c0_75, %c0_76], %58 {strides = array<i32>} : memref<6x18x32xbf16, #tpu.memory_space<vmem>>, vector<1x18x32xbf16>,
    } else {
    }
    %c3_i32 = arith.constant 3 : i32
    %22 = arith.cmpi eq, %arg1, %c3_i32 : i32
    %23 = arith.extui %22 : i1 to i32
    %c0_i32_26 = arith.constant 0 : i32
    %24 = arith.cmpi ne, %23, %c0_i32_26 : i32
    scf.if %24 {
      %cst_73 = arith.constant 0.000000e+00 : bf16
      %58 = vector.broadcast %cst_73 : bf16 to vector<1x18x32xbf16>
      %c5 = arith.constant 5 : index
      %c0_74 = arith.constant 0 : index
      %c0_75 = arith.constant 0 : index
      %59 = vector.load %arg12[%c5, %c0_74, %c0_75] : memref<6x18x32xbf16, #tpu.memory_space<vmem>>, vector<1x18x32xbf16>
      tpu.vector_store %arg12[%c5, %c0_74, %c0_75], %58 {strides = array<i32>} : memref<6x18x32xbf16, #tpu.memory_space<vmem>>, vector<1x18x32xbf16>,
    } else {
    }
    %c0_27 = arith.constant 0 : index
    %c0_28 = arith.constant 0 : index
    %c0_29 = arith.constant 0 : index
    %25 = vector.load %arg12[%c0_27, %c0_28, %c0_29] : memref<6x18x32xbf16, #tpu.memory_space<vmem>>, vector<4x16x32xbf16>
    %c0_30 = arith.constant 0 : index
    %c1_31 = arith.constant 1 : index
    %c0_32 = arith.constant 0 : index
    %26 = vector.load %arg12[%c0_30, %c1_31, %c0_32] : memref<6x18x32xbf16, #tpu.memory_space<vmem>>, vector<4x16x32xbf16>
    %c0_33 = arith.constant 0 : index
    %c2 = arith.constant 2 : index
    %c0_34 = arith.constant 0 : index
    %27 = vector.load %arg12[%c0_33, %c2, %c0_34] : memref<6x18x32xbf16, #tpu.memory_space<vmem>>, vector<4x16x32xbf16>
    %c1_35 = arith.constant 1 : index
    %c0_36 = arith.constant 0 : index
    %c0_37 = arith.constant 0 : index
    %28 = vector.load %arg12[%c1_35, %c0_36, %c0_37] : memref<6x18x32xbf16, #tpu.memory_space<vmem>>, vector<4x16x32xbf16>
    %c1_38 = arith.constant 1 : index
    %c1_39 = arith.constant 1 : index
    %c0_40 = arith.constant 0 : index
    %29 = vector.load %arg12[%c1_38, %c1_39, %c0_40] : memref<6x18x32xbf16, #tpu.memory_space<vmem>>, vector<4x16x32xbf16>
    %c1_41 = arith.constant 1 : index
    %c2_42 = arith.constant 2 : index
    %c0_43 = arith.constant 0 : index
    %30 = vector.load %arg12[%c1_41, %c2_42, %c0_43] : memref<6x18x32xbf16, #tpu.memory_space<vmem>>, vector<4x16x32xbf16>
    %c2_44 = arith.constant 2 : index
    %c0_45 = arith.constant 0 : index
    %c0_46 = arith.constant 0 : index
    %31 = vector.load %arg12[%c2_44, %c0_45, %c0_46] : memref<6x18x32xbf16, #tpu.memory_space<vmem>>, vector<4x16x32xbf16>
    %c2_47 = arith.constant 2 : index
    %c1_48 = arith.constant 1 : index
    %c0_49 = arith.constant 0 : index
    %32 = vector.load %arg12[%c2_47, %c1_48, %c0_49] : memref<6x18x32xbf16, #tpu.memory_space<vmem>>, vector<4x16x32xbf16>
    %c2_50 = arith.constant 2 : index
    %c2_51 = arith.constant 2 : index
    %c0_52 = arith.constant 0 : index
    %33 = vector.load %arg12[%c2_50, %c2_51, %c0_52] : memref<6x18x32xbf16, #tpu.memory_space<vmem>>, vector<4x16x32xbf16>
    %34 = tpu.concatenate %25, %26, %27, %28, %29, %30, %31, %32, %33 in 2 : vector<4x16x32xbf16>, vector<4x16x32xbf16>, vector<4x16x32xbf16>, vector<4x16x32xbf16>, vector<4x16x32xbf16>, vector<4x16x32xbf16>, vector<4x16x32xbf16>, vector<4x16x32xbf16>, vector<4x16x32xbf16> -> vector<4x16x288xbf16>
    %35 = vector.shape_cast %34 : vector<4x16x288xbf16> to vector<64x288xbf16>
    %c0_53 = arith.constant 0 : index
    %c0_54 = arith.constant 0 : index
    %36 = vector.load %arg7[%c0_53, %c0_54] : memref<288x32xbf16, #tpu.memory_space<vmem>>, vector<288x32xbf16>
    %cst_55 = arith.constant dense<0.000000e+00> : vector<64x32xf32>
    %37 = tpu.matmul %35, %36, %cst_55 {dimension_numbers = #tpu.dot_dimension_numbers<[1], [0], [0], [1], [0, 0, 1, 1], [], []>} : vector<64x288xbf16>, vector<288x32xbf16>, vector<64x32xf32> -> vector<64x32xf32>
    %c0_56 = arith.constant 0 : index
    %c0_57 = arith.constant 0 : index
    %38 = vector.load %arg8[%c0_56, %c0_57] : memref<1x32xf32, #tpu.memory_space<vmem>>, vector<1x32xf32>
    %39 = vector.broadcast %38 : vector<1x32xf32> to vector<64x32xf32>
    %40 = arith.addf %37, %39 : vector<64x32xf32>
    %cst_58 = arith.constant 0.000000e+00 : f32
    %41 = vector.broadcast %cst_58 : f32 to vector<64x32xf32>
    %42 = arith.maximumf %40, %41 : vector<64x32xf32>
    %43 = arith.truncf %42 : vector<64x32xf32> to vector<64x32xbf16>
    %c0_59 = arith.constant 0 : index
    %c0_60 = arith.constant 0 : index
    %44 = vector.load %arg9[%c0_59, %c0_60] : memref<32x128xbf16, #tpu.memory_space<vmem>>, vector<32x128xbf16>
    %cst_61 = arith.constant dense<0.000000e+00> : vector<64x128xf32>
    %45 = tpu.matmul %43, %44, %cst_61 {dimension_numbers = #tpu.dot_dimension_numbers<[1], [0], [0], [1], [0, 0, 1, 1], [], []>} : vector<64x32xbf16>, vector<32x128xbf16>, vector<64x128xf32> -> vector<64x128xf32>
    %c0_62 = arith.constant 0 : index
    %c0_63 = arith.constant 0 : index
    %46 = vector.load %arg10[%c0_62, %c0_63] : memref<1x128xf32, #tpu.memory_space<vmem>>, vector<1x128xf32>
    %47 = vector.broadcast %46 : vector<1x128xf32> to vector<64x128xf32>
    %48 = arith.addf %45, %47 : vector<64x128xf32>
    %c0_64 = arith.constant 0 : index
    %c0_65 = arith.constant 0 : index
    %c0_66 = arith.constant 0 : index
    %c0_67 = arith.constant 0 : index
    %49 = vector.load %arg3[%c0_64, %c0_65, %c0_66, %c0_67] : memref<1x4x16x128xbf16, #tpu.memory_space<vmem>>, vector<1x4x16x128xbf16>
    %50 = vector.shape_cast %49 : vector<1x4x16x128xbf16> to vector<64x128xbf16>
    %51 = arith.extf %50 : vector<64x128xbf16> to vector<64x128xf32>
    %52 = arith.addf %48, %51 : vector<64x128xf32>
    %cst_68 = arith.constant 0.000000e+00 : f32
    %53 = vector.broadcast %cst_68 : f32 to vector<64x128xf32>
    %54 = arith.maximumf %52, %53 : vector<64x128xf32>
    %55 = vector.shape_cast %54 : vector<64x128xf32> to vector<1x4x16x128xf32>
    %56 = arith.truncf %55 : vector<1x4x16x128xf32> to vector<1x4x16x128xbf16>
    %c0_69 = arith.constant 0 : index
    %c0_70 = arith.constant 0 : index
    %c0_71 = arith.constant 0 : index
    %c0_72 = arith.constant 0 : index
    %57 = vector.load %arg11[%c0_69, %c0_70, %c0_71, %c0_72] : memref<1x4x16x128xbf16, #tpu.memory_space<vmem>>, vector<1x4x16x128xbf16>
    tpu.vector_store %arg11[%c0_69, %c0_70, %c0_71, %c0_72], %56 {strides = array<i32>} : memref<1x4x16x128xbf16, #tpu.memory_space<vmem>>, vector<1x4x16x128xbf16>,
    return
  }
  func.func @transform_0(%arg0: i32, %arg1: i32) -> (i32, i32, i32, i32) {
    %c4_i32 = arith.constant 4 : i32
    %0 = arith.muli %arg1, %c4_i32 : i32
    %c1_i32 = arith.constant 1 : i32
    %1 = arith.subi %0, %c1_i32 : i32
    %c0_i32 = arith.constant 0 : i32
    %2 = arith.maxsi %1, %c0_i32 : i32
    %c0_i32_0 = arith.constant 0 : i32
    %c0_i32_1 = arith.constant 0 : i32
    %c0_i32_2 = arith.constant 0 : i32
    return %arg0, %2, %c0_i32_0, %c0_i32_1 : i32, i32, i32, i32
  }
  func.func @transform_1(%arg0: i32, %arg1: i32) -> (i32, i32, i32, i32) {
    %c0_i32 = arith.constant 0 : i32
    %c0_i32_0 = arith.constant 0 : i32
    %c0_i32_1 = arith.constant 0 : i32
    return %arg0, %arg1, %c0_i32, %c0_i32_0 : i32, i32, i32, i32
  }
  func.func @transform_2(%arg0: i32, %arg1: i32) -> (i32, i32, i32, i32) {
    %c1_i32 = arith.constant 1 : i32
    %0 = arith.addi %arg1, %c1_i32 : i32
    %c4_i32 = arith.constant 4 : i32
    %1 = arith.muli %0, %c4_i32 : i32
    %c15_i32 = arith.constant 15 : i32
    %2 = arith.minsi %1, %c15_i32 : i32
    %c0_i32 = arith.constant 0 : i32
    %c0_i32_0 = arith.constant 0 : i32
    %c0_i32_1 = arith.constant 0 : i32
    return %arg0, %2, %c0_i32, %c0_i32_0 : i32, i32, i32, i32
  }
  func.func @transform_3(%arg0: i32, %arg1: i32) -> (i32, i32) {
    %c0_i32 = arith.constant 0 : i32
    %c0_i32_0 = arith.constant 0 : i32
    %c0_i32_1 = arith.constant 0 : i32
    return %c0_i32, %c0_i32_0 : i32, i32
  }
  func.func @transform_4(%arg0: i32, %arg1: i32) -> (i32, i32) {
    %c0_i32 = arith.constant 0 : i32
    %c0_i32_0 = arith.constant 0 : i32
    %c0_i32_1 = arith.constant 0 : i32
    return %c0_i32, %c0_i32_0 : i32, i32
  }
  func.func @transform_5(%arg0: i32, %arg1: i32) -> (i32, i32) {
    %c0_i32 = arith.constant 0 : i32
    %c0_i32_0 = arith.constant 0 : i32
    %c0_i32_1 = arith.constant 0 : i32
    return %c0_i32, %c0_i32_0 : i32, i32
  }
  func.func @transform_6(%arg0: i32, %arg1: i32) -> (i32, i32) {
    %c0_i32 = arith.constant 0 : i32
    %c0_i32_0 = arith.constant 0 : i32
    %c0_i32_1 = arith.constant 0 : i32
    return %c0_i32, %c0_i32_0 : i32, i32
  }
  func.func @transform_7(%arg0: i32, %arg1: i32) -> (i32, i32) {
    %c0_i32 = arith.constant 0 : i32
    %c0_i32_0 = arith.constant 0 : i32
    %c0_i32_1 = arith.constant 0 : i32
    return %c0_i32, %c0_i32_0 : i32, i32
  }
  func.func @transform_8(%arg0: i32, %arg1: i32) -> (i32, i32) {
    %c0_i32 = arith.constant 0 : i32
    %c0_i32_0 = arith.constant 0 : i32
    %c0_i32_1 = arith.constant 0 : i32
    return %c0_i32, %c0_i32_0 : i32, i32
  }
  func.func @transform_9(%arg0: i32, %arg1: i32) -> (i32, i32, i32, i32) {
    %c0_i32 = arith.constant 0 : i32
    %c0_i32_0 = arith.constant 0 : i32
    %c0_i32_1 = arith.constant 0 : i32
    return %arg0, %arg1, %c0_i32, %c0_i32_0 : i32, i32, i32, i32
  }
}

</mosaic_0001>

<bundles_post_ra>
// kernel: tpu_custom_call.1
= control target key start
LH: loop header
LB: loop body
LE: loop exit
PB: predicated region body
PF: predicated region fallthrough
CT: control target
= control target key end

     0   :  { %s3590_s0 = inlined_call_operand.vmem [shape: bf16[2,16,16,128], index: 0, kind: input, shape index: {}]   ;;  %s3591_s1 = inlined_call_operand.hbm [shape: bf16[2,16,16,128], index: 1, kind: input, shape index: {}]   ;;  %s3592_s2 = inlined_call_operand.hbm [shape: bf16[2,16,16,128], index: 2, kind: input, shape index: {}]   ;;  %s3593_s3 = inlined_call_operand.vmem [shape: bf16[128,32], index: 3, kind: input, shape index: {}]   ;;  %s3594_s4 = inlined_call_operand.vmem [shape: f32[1,32], index: 4, kind: input, shape index: {}]   ;;  %s3595_s5 = inlined_call_operand.vmem [shape: bf16[288,32], index: 5, kind: input, shape index: {}]   ;;  %s3596_s6 = inlined_call_operand.vmem [shape: f32[1,32], index: 6, kind: input, shape index: {}]   ;;  %s3597_s7 = inlined_call_operand.vmem [shape: bf16[32,128], index: 7, kind: input, shape index: {}]   ;;  %s3598_s8 = inlined_call_operand.vmem [shape: f32[1,128], index: 8, kind: input, shape index: {}]   ;;  %s3599_s9 = inlined_call_operand.hbm [shape: bf16[2,16,16,128], index: 9, kind: output, shape index: {}]  }
   0x1   :  { %3619 = sst [smem:[#allocation18_spill]] %s3591_s1 }
   0x2   :  { %3620 = sst [smem:[#allocation19_spill]] %s3594_s4 }
   0x3   :  { %3621 = sst [smem:[#allocation20_spill]] %s3595_s5 }
   0x4   :  { %3622 = sst [smem:[#allocation21_spill]] %s3596_s6 }
   0x5   :  { %3623 = sst [smem:[#allocation22_spill]] %s3597_s7 }
   0x6   :  { %3624 = sst [smem:[#allocation23_spill]] %s3598_s8 }
   0x7   :  { %3625 = sst [smem:[#allocation24_spill]] %s3599_s9 }
   0x8   :  { %14 = vsyncpa [#allocation4], 0 }
   0x9   :  { %16 = vsyncpa [#allocation4 + $0x1], 0 }
   0xa   :  { %17 = vsyncpa [#allocation7], 0 }
   0xb   :  { %19 = vsyncpa [#allocation7 + $0x1], 0 }
   0xc   :  { %20 = vsyncpa [#allocation5], 0 }
   0xd   :  { %22 = vsyncpa [#allocation5 + $0x1], 0  ;;  %s2842_s30 = smov 0   ;;  %s2844_s10 = smov 0  }
   0xe   :  { %s2846_s11 = smov 0   ;;  %s2848_s12 = smov 0  }
   0xf   :  { %s2850_s13 = smov 0   ;;  %s2852_s14 = smov 0  }
  0x10   :  { %s2854_s15 = smov 0   ;;  %s2856_s16 = smov 0  }
  0x11   :  { %s2858_s17 = smov 0   ;;  %s2860_s18 = smov 0  }
  0x12   :  { %s2862_s19 = smov 0  }
  0x13 LB: > { %3626 = sst [smem:[#allocation12_spill]] %s2751_s12  ;;  %s2074_s20 = sadd.s32 4294967295, %s2779_s19   ;;  %s2779_s19 = sphi %s2862_s19, %s28_s19   ;;  %s2775_s18 = sphi %s2860_s18, %s3683_s18   ;;  %s2771_s17 = sphi %s2858_s17, %s3682_s17   ;;  %s2767_s16 = sphi %s2856_s16, %s3681_s16   ;;  %s2763_s15 = sphi %s2854_s15, %s3672_s15   ;;  %s2759_s14 = sphi %s2852_s14, %s3680_s14   ;;  %s2755_s13 = sphi %s2850_s13, %s3679_s13   ;;  %s2751_s12 = sphi %s2848_s12, %s3678_s12   ;;  %s2747_s11 = sphi %s2846_s11, %s3677_s11   ;;  %s2743_s10 = sphi %s2844_s10, %s3676_s10   ;;  %s2739_s30 = sphi %s2842_s30, %s3675_s30  }
  0x14   : > { %3627 = sst [smem:[#allocation13_spill]] %s2771_s17  ;;  %s2075_s21 = sadd.s32 4294967294, %s2779_s19  }
  0x15   : > { %s37_s22 = sadd.s32 1, %s2771_s17  ;;  %s40_s23 = sadd.s32 1, %s2775_s18 }
  0x16   : > { %p38_p0 = scmp.ge.s32.totalorder %s37_s22, 4  ;;  %p92_p1 = scmp.ne.s32.totalorder %s2759_s14, %s2755_s13 }
  0x17   : > { %p3608_p2 = scmp.eq.s32.totalorder %s2779_s19, 0  ;;  %p98_p4 = scmp.ne.s32.totalorder %s2755_s13, %s2751_s12 }
  0x18   : > { %s3685_s22 = smov (%p38_p0, %s37_s22), 0  ;;  %s3687_s23 = smov (!%p38_p0, %s40_s23), %s2775_s18 }
  0x19   : > { %3628 = sst [smem:[#allocation14_spill]] %s3685_s22  ;;  %p2912_p3 = por %p3608_p2, %p92_p1 }
  0x1a   : > { %p2918_p5 = scmp.eq.s32.totalorder %s2074_s20, 0  ;;  %p286_p6 = scmp.eq.s32.totalorder %s2074_s20, 7 }
  0x1b   : > { %p292_p7 = scmp.eq.s32.totalorder %s2075_s21, 7  ;;  %p3607_p11 = scmp.lt.s32.totalorder %s2779_s19, 8 }
  0x1c   : > { %p2924_p8 = por %p2918_p5, %p98_p4  ;;  %p2928_p9 = por %p286_p6, %p92_p1 }
  0x1d   : > { %p2932_p10 = por %p292_p7, %p98_p4  ;;  %s350_s24 = sand.u32 1, %s2759_s14  }
  0x1e   : > { %s3631_s27 = scalar_select %p2924_p8, 1, 0 }
  0x1f   : > { %s3632_s28 = scalar_select %p2928_p9, 1, 0 }
  0x20   : > { %s3634_s29 = scalar_select %p2932_p10, 1, 0 }
  0x21   : > { %3633 = sst [smem:[#allocation15_spill]] %s3632_s28  ;;  %s2222_s20 = sshll.u32 %s2771_s17, 3 }
  0x22   : > { %3635 = sst [smem:[#allocation16_spill]] %s3634_s29  ;;  %s2084_s12 = sshll.u32 %s350_s24, 5 }
  0x23   : > { %s3613_s9 = sshll.u32 %s2775_s18, 5  ;;  %s354_s8 = scalar_lea.vmem [#allocation3], %s2084_s12 }
  0x24   : > { %s361_s21 = sadd.s32 %s2222_s20, %s3613_s9  ;;  %s364_s6 = sshll.u32 %s354_s8, 4  ;;  %s2942_s6 = int_to_ptr.vmem [resolvable:$true] %s364_s6 }
  0x25   : > { %s2088_s7 = sshll.u32 %s361_s21, 6  ;;  %s3636_s1 = sld [smem:[#allocation18_spill]] }
  0x26   : > { %p2953_p12 = pnand %p3607_p11, %p2912_p3  ;;  %s2958_s8 = scalar_lea.sflag [#allocation4], %s350_s24 }
  0x28   : > { %p2595_p1 = pneg %p2953_p12 }
  0x2b   : > { %s2947_s28 = scalar_lea.hbm %s3636_s1, %s2088_s7  ;;  %s2598_s7 = scalar_lea.hbm %s3636_s1, 4096 }
  0x2c   : > { %s2593_s12 = scalar_lea.hbm %s2947_s28, 512  ;;  %p2599_p3 = scmp.lt.u32.totalorder %s2947_s28, %s3636_s1 }
  0x2d   : > { %p2594_p0 = scmp.ne.s32.totalorder %s2947_s28, %s2593_s12  ;;  %p2600_p7 = scmp.lt.u32.totalorder %s2598_s7, %s2593_s12 }
  0x2e   : > { %p2602_p2 = scmp.lt.u32.totalorder %s2593_s12, %s2947_s28 }
  0x2f   : > { %p2596_p4 = pnand %p2595_p1, %p2594_p0  ;;  %p2601_p11 = por %p2600_p7, %p2599_p3 }
  0x31   : > { %p2597_p6 = pneg %p2596_p4  ;;  %p2603_p13 = por %p2602_p2, %p2601_p11 }
  0x33   : > { %p2604_p10 = pnand %p2603_p13, %p2597_p6 }
  0x35   : > { %2607 = shalt.err (!%p2604_p10)
}
  0x36   : > { %s2608_s24 = scalar_lea.vmem %s2942_s6, 512  ;;  %s2781_s21 = smov [#allocation3]  }
  0x37   : > { %p2609_p0 = scmp.ne.s32.totalorder %s2942_s6, %s2608_s24  ;;  %s2613_s4 = sshll.u32 %s2781_s21, 4  ;;  %s2614_s4 = int_to_ptr.vmem [resolvable:$false] %s2613_s4 }
  0x38   : > { %s2615_s5 = scalar_lea.vmem %s2614_s4, 1024  ;;  %p2616_p8 = scmp.lt.s32.totalorder %s2942_s6, %s2614_s4 }
  0x39   : > { %p2611_p4 = pnand %p2609_p0, %p2595_p1  ;;  %p2617_p3 = scmp.lt.s32.totalorder %s2615_s5, %s2608_s24 }
  0x3b   : > { %p2612_p9 = pneg %p2611_p4  ;;  %p2618_p7 = por %p2617_p3, %p2616_p8 }
  0x3d   : > { %p2619_p2 = pnand %p2618_p7, %p2612_p9 }
  0x3f   : > { %2622 = shalt.err (!%p2619_p2)
}
  0x40   : > { %s3611_s12 = smov 64   ;;  %s3612_s7 = smov 4  }
  0x41   : > { %2417 = dma.hbm_to_vmem [thread:$0]  (!%p2953_p12), %s2947_s28, 512, %s2942_s6, %s2958_s8, %s3611_s12, %s3611_s12, %s3612_s7  }
  0x42   : > { %p399_p8 = scmp.lt.s32.totalorder %s2779_s19, 9  ;;  %p3638_p9 = scmp.ge.s32.totalorder %s2779_s19, 1 }
  0x43   : > { %p42_p11 = scmp.ge.s32.totalorder %s3687_s23, 2  ;;  %s81_s20 = ssub.s32 %s2771_s17, %s3685_s22 }
  0x44   : > { %p2992_p10 = pnand %p3638_p9, %p399_p8  ;;  %s2218_s29 = sshll.u32 %s2771_s17, 2 }
  0x45   : > { %s2220_s24 = sshll.u32 %s3685_s22, 2  ;;  %s3689_s23 = smov (%p42_p11, %s3687_s23), 0 }
  0x46   : > { %3640 = sst [smem:[#allocation17_spill]] %s3689_s23  ;;  %s2219_s6 = sadd.s32 4, %s2218_s29 }
  0x47   : > { %s2221_s28 = sadd.s32 4, %s2220_s24  ;;  %s80_s8 = ssub.s32 %s2775_s18, %s3689_s23 }
  0x48   : > { %p110_p12 = scmp.lt.s32.totalorder %s2219_s6, 15  ;;  %s82_s21 = sor.u32 %s81_s20, %s80_s8 }
  0x49   : > { %p114_p13 = scmp.lt.s32.totalorder %s2221_s28, 15  ;;  %p83_p1 = scmp.eq.s32.totalorder %s82_s21, 0 }
  0x4a   : > { %s121_s4 = sadd.s32 1, %s2747_s11  ;;  %s3691_s6 = smov (!%p110_p12, %s2219_s6), 15 }
  0x4b   : > { %s3641_s5 = sadd.s32 1, %s2759_s14  ;;  %s3693_s28 = smov (!%p114_p13, %s2221_s28), 15 }
  0x4c   : > { %s3010_s12 = scalar_select %p83_p1, %s2759_s14, %s3641_s5  }
  0x4d   : > { %p128_p6 = scmp.ne.s32.totalorder %s2747_s11, %s2743_s10  ;;  %p134_p0 = scmp.ne.s32.totalorder %s2743_s10, %s2739_s30 }
  0x4e   : > { %s117_s29 = ssub.s32 %s3691_s6, %s3693_s28  ;;  %s374_s7 = sand.u32 1, %s2747_s11  }
  0x4f   : > { %s118_s24 = sor.u32 %s117_s29, %s80_s8  ;;  %p3642_p4 = scmp.eq.s32.totalorder %s2779_s19, 0 }
  0x50   : > { %p119_p7 = scmp.eq.s32.totalorder %s118_s24, 0  ;;  %p3021_p2 = por %p134_p0, %p2918_p5 }
  0x51   : > { %p130_p3 = por %p128_p6, %p3642_p4  ;;  %s2089_s21 = sshll.u32 %s374_s7, 3 }
  0x52   : > { %s3643_s20 = scalar_select %p3021_p2, 1, 0 }
  0x53   : > { %s3026_s9 = scalar_select %p119_p7, %s2747_s11, %s121_s4  }
  0x54   : > { %s2091_s5 = sshll.u32 %s3691_s6, 1  ;;  %s3644_s1 = sshll.u32 %s2775_s18, 5 }
  0x55   : > { %s388_s23 = sadd.s32 %s2091_s5, %s3644_s1  ;;  %s378_s22 = scalar_lea.vmem [#allocation6], %s2089_s21 }
  0x56   : > { %s391_s30 = sshll.u32 %s378_s22, 4  ;;  %s2093_s17 = sshll.u32 %s388_s23, 6  ;;  %s3030_s30 = int_to_ptr.vmem [resolvable:$true] %s391_s30 }
  0x57   : > { %s3035_s29 = scalar_lea.hbm %s3592_s2, %s2093_s17  ;;  %p3645_p5 = scmp.lt.s32.totalorder %s2779_s19, 8 }
  0x58   : > { %s3043_s1 = scalar_lea.sflag [#allocation7], %s374_s7  ;;  %s2623_s22 = scalar_lea.hbm %s3035_s29, 128 }
  0x59   : > { %p3039_p8 = pnand %p3645_p5, %p130_p3  ;;  %p2624_p9 = scmp.ne.s32.totalorder %s3035_s29, %s2623_s22 }
  0x5a   : > { %s2628_s6 = scalar_lea.hbm %s3592_s2, 4096  ;;  %p2629_p1 = scmp.lt.u32.totalorder %s3035_s29, %s3592_s2 }
  0x5b   : > { %p2625_p11 = pneg %p3039_p8  ;;  %p2630_p6 = scmp.lt.u32.totalorder %s2628_s6, %s2623_s22 }
  0x5c   : > { %p2632_p4 = scmp.lt.u32.totalorder %s2623_s22, %s3035_s29 }
  0x5d   : > { %p2626_p12 = pnand %p2625_p11, %p2624_p9  ;;  %p2631_p0 = por %p2630_p6, %p2629_p1 }
  0x5f   : > { %p2627_p13 = pneg %p2626_p12  ;;  %p2633_p3 = por %p2632_p4, %p2631_p0 }
  0x61   : > { %p2634_p7 = pnand %p2633_p3, %p2627_p13 }
  0x63   : > { %2637 = shalt.err (!%p2634_p7)
}
  0x64   : > { %s2638_s7 = scalar_lea.vmem %s3030_s30, 128  ;;  %s2784_s21 = smov [#allocation6]  }
  0x65   : > { %p2639_p5 = scmp.ne.s32.totalorder %s3030_s30, %s2638_s7  ;;  %s2643_s5 = sshll.u32 %s2784_s21, 4  ;;  %s2644_s5 = int_to_ptr.vmem [resolvable:$false] %s2643_s5 }
  0x66   : > { %s2645_s28 = scalar_lea.vmem %s2644_s5, 256  ;;  %p2646_p2 = scmp.lt.s32.totalorder %s3030_s30, %s2644_s5 }
  0x67   : > { %p2641_p9 = pnand %p2639_p5, %p2625_p11  ;;  %p2647_p1 = scmp.lt.s32.totalorder %s2645_s28, %s2638_s7 }
  0x69   : > { %p2642_p12 = pneg %p2641_p9  ;;  %p2648_p6 = por %p2647_p1, %p2646_p2 }
  0x6b   : > { %p2649_p0 = pnand %p2648_p6, %p2642_p12 }
  0x6d   : > { %2652 = shalt.err (!%p2649_p0)
}
  0x6e   : > { %s3647_s8 = smov 4   ;;  %s3648_s22 = smov 64  }
  0x6f   : > { %2420 = dma.hbm_to_vmem [thread:$0]  (!%p3039_p8), %s3035_s29, 128, %s3030_s30, %s3043_s1, %s3648_s22, %s3648_s22, %s3647_s8  }
  0x70   : > { %403 = sbr.rel (%p2992_p10) target bundleno = 1049 (0x419), region = 56  ;;  %s3077_s17 = sand.u32 (!%p2992_p10), 1, %s2755_s13  }
  0x71   : > { %s3618_s23 = sshll.u32 (!%p2992_p10), %s3077_s17, 5  ;;  %s406_s6 = scalar_lea.sflag (!%p2992_p10), [#allocation4], %s3077_s17 }
  0x72   : > { %s3083_s26 = scalar_lea.vmem (!%p2992_p10), [#allocation3], %s3618_s23  ;;  %p3649_p2 = scmp.ne.s32.totalorder (!%p2992_p10), %s3631_s27, 0 }
  0x77   : > { %2726 = dma.done.wait (%p3649_p2), %s406_s6, 512  }
  0x78   : > { %2728 = vsyncadd (%p3649_p2), %s406_s6, 4294966784  ;;  %s414_s25 = sand.u32 1, %s2743_s10   ;;  %p3650_p10 = scmp.ne.s32.totalorder %s3643_s20, 0 }
  0x79   : > { %s3090_s30 = sshll.u32 %s414_s25, 3  ;;  %s415_s29 = scalar_lea.sflag [#allocation7], %s414_s25 }
  0x7a   : > { %s418_s1 = scalar_lea.vmem [#allocation6], %s3090_s30 }
  0x7b   : > { %2730 = dma.done.wait (%p3650_p10), %s415_s29, 128  }
  0x7c   : > { %2732 = vsyncadd (%p3650_p10), %s415_s29, 4294967168  ;;  %s2098_s4 = sshll.u32 %s2763_s15, 2  ;;  %p475_p8 = scmp.lt.s32.totalorder %s2767_s16, 1  ;;  %v2523_v0 = vld [vmem:[%s3593_s3] sm:$0xff]   ;;  %v2524_v1 = vld [vmem:[%s3593_s3 + $0x8] sm:$0xff]   ;;  %vm713_vm0 = vcmask 253952  }
  0x7d   : > { %s2099_s24 = sadd.s32 4294967295, %s2098_s4  ;;  %2356 = vmatprep.subr.bf16.mxu0 %v2523_v0  ;;  %v2525_v2 = vld [vmem:[%s3593_s3 + $0x10] sm:$0xff]   ;;  %v2526_v3 = vld [vmem:[%s3593_s3 + $0x18] sm:$0xff]   ;;  %v2527_v5 = vld [vmem:[%s3593_s3 + $0x20] sm:$0xff]   ;;  %vm714_vm1 = vsmask.f32 256 }
  0x7e   : > { %p473_p11 = scmp.gt.s32.totalorder %s2099_s24, 0  ;;  %p2100_p13 = scmp.lt.s32.totalorder %s2099_s24, 15  ;;  %2357 = vmatpush3.bf16.msra.mxu0 %v2523_v0  ;;  %v2528_v6 = vld [vmem:[%s3593_s3 + $0x28] sm:$0xff]   ;;  %v2529_v7 = vld [vmem:[%s3593_s3 + $0x30] sm:$0xff]   ;;  %v2530_v8 = vld [vmem:[%s3593_s3 + $0x38] sm:$0xff]   ;;  %vm906_vm5 = vcmask 257024  }
  0x7f   : > { %s476_s27 = scalar_select %p475_p8, %s2767_s16, 1  ;;  %2358 = vmatprep.subr.bf16.mxu0 %v2524_v1  ;;  %v2532_v9 = vld [vmem:[%s3083_s26] sm:$0xff]   ;;  %v2533_v10 = vld [vmem:[%s3083_s26 + $0x8] sm:$0xff]   ;;  %v2534_v11 = vld [vmem:[%s3083_s26 + $0x10] sm:$0xff]   ;;  %vm734_vm3 = vsmask.f32 7938 }
  0x80   : > { %s3695_s24 = smov (!%p473_p11, %s2099_s24), 0  ;;  %v2535_v12 = vld [vmem:[%s3083_s26 + $0x18] sm:$0xff]   ;;  %v2536_v13 = vld [vmem:[%s418_s1] sm:$0xff]   ;;  %vm3135_vm2 = vmand %vm713_vm0, %vm714_vm1  ;;  %s3655_s25 = sld [smem:[#allocation19_spill]]  ;;  %vm784_vm6 = vsmask.f32 4368 }
  0x81   : > { %s2106_s7 = sshll.u32 %s476_s27, 5  ;;  %s3697_s24 = smov (!%p2100_p13, %s3695_s24), 15  ;;  %v719_v15 = vld [vmem:[#allocation2 + $0xc] sm:$0x1]  ;;  %vm3143_vm4 = vmand %vm713_vm0, %vm734_vm3  ;;  %v716_v18 = vld [vmem:[#allocation2] sm:$0x1] }
  0x82   : > { %s2105_s20 = sshll.u32 %s3697_s24, 1  ;;  %2359 = vmatpush3.bf16.msra.mxu0 %v2524_v1  ;;  %v720_v16 = vsel %vm3135_vm2, 0, %v719_v15  ;;  %v717_v19 = vsel %vm3135_vm2, 0, %v716_v18  ;;  %v739_v20 = vld [vmem:[#allocation2 + $0x14] sm:$0x1]  ;;  %vm3181_vm7 = vmand %vm906_vm5, %vm734_vm3  ;;  %s3660_s29 = sshll.u32 %s3077_s17, 5 }
  0x83   : > { %s481_s22 = sadd.s32 %s2106_s7, %s2105_s20  ;;  %2360 = vmatprep.subr.bf16.mxu0 %v2525_v2  ;;  %721 = vst [vmem:[#allocation2 + $0xc] sm:$0x1] %v720_v16  ;;  %718 = vst [vmem:[#allocation2] sm:$0x1] %v717_v19  ;;  %v740_v21 = vsel %vm3143_vm4, 0, %v739_v20  ;;  %s3242_s4 = scalar_lea.vmem [#allocation8], %s3660_s29 }
  0x84   : > { %s2107_s6 = sshll.u32 %s481_s22, 2  ;;  %v736_v22 = vld [vmem:[#allocation2 + $0x8] sm:$0x1]  ;;  %741 = vst [vmem:[#allocation2 + $0x14] sm:$0x1] %v740_v21  ;;  %vm3188_vm8 = vmor %vm714_vm1, %vm784_vm6  ;;  %p2135_p4 = scmp.ne.s32.totalorder %s2763_s15, 0 }
  0x85   : > { %s483_s23 = scalar_lea.vmem %s3590_s0, %s2107_s6  ;;  %v737_v23 = vsel %vm3143_vm4, 0, %v736_v22  ;;  %v725_v24 = vld [vmem:[#allocation2 + $0x24] sm:$0x1]  ;;  %v722_v26 = vld [vmem:[#allocation2 + $0x18] sm:$0x1] }
  0x86   : > { %v2531_v4 = vld [vmem:[%s483_s23] sm:$0xff]   ;;  %2361 = vmatpush3.bf16.msra.mxu0 %v2525_v2  ;;  %738 = vst [vmem:[#allocation2 + $0x8] sm:$0x1] %v737_v23  ;;  %v726_v25 = vsel %vm3135_vm2, 0, %v725_v24  ;;  %v723_v27 = vsel %vm3135_vm2, 0, %v722_v26 }
  0x87   : > { %2372 = vmatprep.mubr.bf16.mxu0 %v2531_v4  ;;  %2362 = vmatprep.subr.bf16.mxu0 %v2526_v3  ;;  %727 = vst [vmem:[#allocation2 + $0x24] sm:$0x1] %v726_v25  ;;  %724 = vst [vmem:[#allocation2 + $0x18] sm:$0x1] %v723_v27  ;;  %v745_v28 = vld [vmem:[#allocation2 + $0x2c] sm:$0x1] }
  0x88   : > { %v746_v29 = vsel %vm3143_vm4, 0, %v745_v28  ;;  %v742_v30 = vld [vmem:[#allocation2 + $0x20] sm:$0x1]  ;;  %v731_v32 = vld [vmem:[#allocation2 + $0x3c] sm:$0x1] }
  0x89   : > { %747 = vst [vmem:[#allocation2 + $0x2c] sm:$0x1] %v746_v29  ;;  %v743_v31 = vsel %vm3143_vm4, 0, %v742_v30  ;;  %v732_v33 = vsel %vm3135_vm2, 0, %v731_v32  ;;  %v728_v34 = vld [vmem:[#allocation2 + $0x30] sm:$0x1] }
  0x8a   : > { %2363 = vmatpush3.bf16.msra.mxu0 %v2526_v3  ;;  %744 = vst [vmem:[#allocation2 + $0x20] sm:$0x1] %v743_v31  ;;  %733 = vst [vmem:[#allocation2 + $0x3c] sm:$0x1] %v732_v33  ;;  %v729_v35 = vsel %vm3135_vm2, 0, %v728_v34 }
  0x8b   : > { %2364 = vmatprep.subr.bf16.mxu0 %v2527_v5  ;;  %v751_v36 = vld [vmem:[#allocation2 + $0x44] sm:$0x1]  ;;  %730 = vst [vmem:[#allocation2 + $0x30] sm:$0x1] %v729_v35  ;;  %v748_v38 = vld [vmem:[#allocation2 + $0x38] sm:$0x1] }
  0x8c   : > { %v752_v37 = vsel %vm3143_vm4, 0, %v751_v36  ;;  %v749_v39 = vsel %vm3143_vm4, 0, %v748_v38  ;;  %v3172_v40 = vld [vmem:[%s3655_s25] ss:$0 sm:$0xff]  ;;  %v916_v4 = vld [vmem:[#allocation2 + $0xc] sm:$0xf] }
  0x8d   : > { %753 = vst [vmem:[#allocation2 + $0x44] sm:$0x1] %v752_v37  ;;  %750 = vst [vmem:[#allocation2 + $0x38] sm:$0x1] %v749_v39  ;;  %v920_v20 = vld [vmem:[#allocation2 + $0x14] sm:$0x1] }
  0x8e   : > { %2365 = vmatpush3.bf16.msra.mxu0 %v2527_v5  ;;  %v913_v26 = vld [vmem:[#allocation2 + $0x8] sm:$0x1] }
  0x8f   : > { %2366 = vmatprep.subr.bf16.mxu0 %v2528_v6 }
  0x92   : > { %2367 = vmatpush3.bf16.msra.mxu0 %v2528_v6 }
  0x93   : > { %2368 = vmatprep.subr.bf16.mxu0 %v2529_v7 }
  0x96   : > { %2369 = vmatpush3.bf16.msra.mxu0 %v2529_v7 }
  0x97   : > { %2370 = vmatprep.subr.bf16.mxu0 %v2530_v8 }
  0x9a   : > { %2371 = vmatpush3.bf16.msra.mxu0 %v2530_v8 }
  0x9d   : > { %2373 = vmatmul.mubr.bf16.vlgmr.msra.gmra.mrb[0].mxu0 %v2532_v9 }
  0x9e   : > { %2376 = vmatprep.mubr.bf16.mxu0 %v2533_v10 }
  0xa5   : > { %2377 = vmatmul.mubr.bf16.gmra.mrb[4].mxu0 %v2534_v11 }
  0xa6   : > { %2380 = vmatprep.mubr.bf16.mxu0 %v2535_v12  ;;  %v908_v12 = vld [vmem:[#allocation2] sm:$0xf] }
  0xad   : > { %2381 = vmatmul.mubr.bf16.gmra.mrb[8].mxu0 %v2536_v13 }
 0x170   : > { %v2374_v41 = vpop.f32.mrb[0].mxu0 }
 0x171   : > { %v657_v42 = vadd.f32 %v2374_v41, %v3172_v40  ;;  %v648_v43 = vpop.f32.mrb[1].mxu0 }
 0x172   : > { %v649_v44 = vadd.f32 %v3172_v40, %v648_v43  ;;  %v2375_v45 = vpop.f32.mrb[2].mxu0 }
 0x173   : > { %v697_v46 = vmax.f32 %v657_v42, 0.0  ;;  %v660_v47 = vadd.f32 %v2375_v45, %v3172_v40  ;;  %v651_v48 = vpop.f32.mrb[3].mxu0 }
 0x174   : > { %v695_v49 = vmax.f32 %v649_v44, 0.0  ;;  %v652_v50 = vadd.f32 %v3172_v40, %v651_v48 }
 0x175   : > { %v2229_v51 = vpack.c.bf16 %v697_v46, %v697_v46  ;;  %v698_v52 = vmax.f32 %v660_v47, 0.0  ;;  %v930_v46 = vld [vmem:[#allocation2 + $0x24] sm:$0xf] }
 0x176   : > { %v2227_v53 = vpack.c.bf16 %v695_v49, %v695_v49  ;;  %v696_v54 = vmax.f32 %v652_v50, 0.0 }
 0x177   : > { %v804_v55 = vshrl.u32 %v2229_v51, 16  ;;  %v2230_v56 = vpack.c.bf16 %v698_v52, %v698_v52  ;;  %v807_v57 = vshll.u32 %v2229_v51, 16  ;;  %v923_v52 = vld [vmem:[#allocation2 + $0x18] sm:$0xf] }
 0x178   : > { %v787_v58 = vshrl.u32 %v2227_v53, 16  ;;  %v790_v59 = vshll.u32 %v2227_v53, 16  ;;  %v2228_v60 = vpack.c.bf16 %v696_v54, %v696_v54  ;;  %v2378_v61 = vpop.f32.mrb[4].mxu0 }
 0x179   : > { %v806_v62 = vrot.slane %v804_v55, 7  ;;  %v812_v63 = vshrl.u32 %v2230_v56, 16  ;;  %v815_v0 = vshll.u32 %v2230_v56, 16  ;;  %v673_v1 = vadd.f32 %v2378_v61, %v3172_v40  ;;  %v664_v2 = vpop.f32.mrb[5].mxu0 }
 0x17a   : > { %v789_v5 = vrot.slane %v787_v58, 7  ;;  %v795_v6 = vshrl.u32 %v2228_v60, 16  ;;  %v798_v7 = vshll.u32 %v2228_v60, 16  ;;  %v665_v8 = vadd.f32 %v3172_v40, %v664_v2  ;;  %v2379_v9 = vpop.f32.mrb[6].mxu0 }
 0x17b   : > { %v809_v10 = vor.u32 %v807_v57, %v806_v62  ;;  %v810_v11 = vrot.slane %v806_v62, 4  ;;  %v814_v13 = vrot.slane %v812_v63, 7  ;;  %v701_v15 = vmax.f32 %v673_v1, 0.0  ;;  %v667_v16 = vpop.f32.mrb[7].mxu0 }
 0x17c   : > { %v792_v17 = vor.u32 %v790_v59, %v789_v5  ;;  %v793_v18 = vrot.slane %v789_v5, 4  ;;  %v797_v21 = vrot.slane %v795_v6, 7  ;;  %v699_v22 = vmax.f32 %v665_v8, 0.0 }
 0x17d   : > { %v917_v23 = vsel %vm3181_vm7, %v809_v10, %v916_v4  ;;  %v817_v24 = vor.u32 %v815_v0, %v814_v13  ;;  %v819_v25 = vrot.slane %v814_v13, 4  ;;  %v2233_v27 = vpack.c.bf16 %v701_v15, %v701_v15  ;;  %v934_v13 = vld [vmem:[#allocation2 + $0x2c] sm:$0x1] }
 0x17e   : > { %918 = vst [vmem:[#allocation2 + $0xc] sm:$0xf] %v917_v23  ;;  %v909_v28 = vsel %vm3181_vm7, %v792_v17, %v908_v12  ;;  %v800_v29 = vor.u32 %v798_v7, %v797_v21  ;;  %v802_v30 = vrot.slane %v797_v21, 4  ;;  %v2231_v31 = vpack.c.bf16 %v699_v22, %v699_v22 }
 0x17f   : > { %910 = vst [vmem:[#allocation2] sm:$0xf] %v909_v28  ;;  %v818_v32 = vsel %vm3188_vm8, %v810_v11, %v817_v24  ;;  %v921_v33 = vsel %vm3135_vm2, %v819_v25, %v920_v20  ;;  %v838_v34 = vshrl.u32 %v2233_v27, 16  ;;  %v841_v37 = vshll.u32 %v2233_v27, 16  ;;  %v944_v27 = vld [vmem:[#allocation2 + $0x3c] sm:$0xf] }
 0x180   : > { %919 = vst.msk [vmem:[#allocation2 + $0x10] sm:$0xf] %vm906_vm5, %v818_v32  ;;  %922 = vst [vmem:[#allocation2 + $0x14] sm:$0x1] %v921_v33  ;;  %v801_v35 = vsel %vm3188_vm8, %v793_v18, %v800_v29  ;;  %v914_v36 = vsel %vm3135_vm2, %v802_v30, %v913_v26  ;;  %v821_v38 = vshrl.u32 %v2231_v31, 16  ;;  %v2382_v39 = vpop.f32.mrb[8].mxu0  ;;  %v676_v42 = vadd.f32 %v2379_v9, %v3172_v40 }
 0x181   : > { %912 = vst.msk [vmem:[#allocation2 + $0x4] sm:$0xf] %vm906_vm5, %v801_v35  ;;  %915 = vst [vmem:[#allocation2 + $0x8] sm:$0x1] %v914_v36  ;;  %v840_v41 = vrot.slane %v838_v34, 7  ;;  %v668_v43 = vadd.f32 %v3172_v40, %v667_v16  ;;  %v689_v44 = vadd.f32 %v2382_v39, %v3172_v40  ;;  %v680_v45 = vpop.f32.mrb[9].mxu0 }
 0x182   : > { %v823_v47 = vrot.slane %v821_v38, 7  ;;  %v824_v48 = vshll.u32 %v2231_v31, 16  ;;  %v681_v49 = vadd.f32 %v3172_v40, %v680_v45  ;;  %v2383_v50 = vpop.f32.mrb[10].mxu0  ;;  %v702_v53 = vmax.f32 %v676_v42, 0.0  ;;  %v927_v18 = vld [vmem:[#allocation2 + $0x20] sm:$0x1] }
 0x183   : > { %v843_v51 = vor.u32 %v841_v37, %v840_v41  ;;  %v700_v54 = vmax.f32 %v668_v43, 0.0  ;;  %v683_v55 = vpop.f32.mrb[11].mxu0  ;;  %v705_v57 = vmax.f32 %v689_v44, 0.0  ;;  %v692_v62 = vadd.f32 %v2383_v50, %v3172_v40  ;;  %v937_v28 = vld [vmem:[#allocation2 + $0x30] sm:$0xf] }
 0x184   : > { %v826_v56 = vor.u32 %v824_v48, %v823_v47  ;;  %v703_v58 = vmax.f32 %v681_v49, 0.0  ;;  %v2234_v60 = vpack.c.bf16 %v702_v53, %v702_v53  ;;  %v684_v2 = vadd.f32 %v3172_v40, %v683_v55  ;;  %v948_v48 = vld [vmem:[#allocation2 + $0x44] sm:$0x1]  ;;  %v941_v49 = vld [vmem:[#allocation2 + $0x38] sm:$0x1] }
 0x185   : > { %v931_v59 = vsel %vm3181_vm7, %v843_v51, %v930_v46  ;;  %v2232_v61 = vpack.c.bf16 %v700_v54, %v700_v54  ;;  %v2237_v0 = vpack.c.bf16 %v705_v57, %v705_v57  ;;  %v844_v4 = vrot.slane %v840_v41, 4 }
 0x186   : > { %932 = vst [vmem:[#allocation2 + $0x24] sm:$0xf] %v931_v59  ;;  %v924_v63 = vsel %vm3181_vm7, %v826_v56, %v923_v52  ;;  %v2235_v1 = vpack.c.bf16 %v703_v58, %v703_v58  ;;  %v827_v5 = vrot.slane %v823_v47, 4  ;;  %v846_v6 = vshrl.u32 %v2234_v60, 16 }
 0x187   : > { %925 = vst [vmem:[#allocation2 + $0x18] sm:$0xf] %v924_v63  ;;  %v829_v7 = vshrl.u32 %v2232_v61, 16  ;;  %v849_v8 = vshll.u32 %v2234_v60, 16  ;;  %v832_v9 = vshll.u32 %v2232_v61, 16  ;;  %v872_v10 = vshrl.u32 %v2237_v0, 16 }
 0x188   : > { %v855_v11 = vshrl.u32 %v2235_v1, 16  ;;  %v848_v12 = vrot.slane %v846_v6, 7  ;;  %v875_v16 = vshll.u32 %v2237_v0, 16  ;;  %v858_v17 = vshll.u32 %v2235_v1, 16 }
 0x189   : > { %v831_v15 = vrot.slane %v829_v7, 7  ;;  %v874_v20 = vrot.slane %v872_v10, 7  ;;  %v706_v22 = vmax.f32 %v692_v62, 0.0  ;;  %v704_v23 = vmax.f32 %v684_v2, 0.0 }
 0x18a   : > { %v857_v21 = vrot.slane %v855_v11, 7  ;;  %v851_v40 = vor.u32 %v849_v8, %v848_v12  ;;  %v853_v24 = vrot.slane %v848_v12, 4  ;;  %v2785_v57 = vmov (!%p2135_p4), 0  }
 0x18b   : > { %v834_v25 = vor.u32 %v832_v9, %v831_v15  ;;  %v836_v26 = vrot.slane %v831_v15, 4  ;;  %v877_v29 = vor.u32 %v875_v16, %v874_v20  ;;  %v2238_v37 = vpack.c.bf16 %v706_v22, %v706_v22  ;;  %955 = vst.msk [vmem:[#allocation2] sm:$0xf] (!%p2135_p4), %vm906_vm5, %v2785_v57  ;;  %956 = vst.msk [vmem:[#allocation2 + $0x4] sm:$0xf] (!%p2135_p4), %vm906_vm5, %v2785_v57 }
 0x18c   : > { %v860_v30 = vor.u32 %v858_v17, %v857_v21  ;;  %v852_v31 = vsel %vm3188_vm8, %v844_v4, %v851_v40  ;;  %v935_v32 = vsel %vm3135_vm2, %v853_v24, %v934_v13  ;;  %v2236_v38 = vpack.c.bf16 %v704_v23, %v704_v23  ;;  %958 = vst.msk [vmem:[#allocation2 + $0x8] sm:$0x1] (!%p2135_p4), %vm713_vm0, %v2785_v57 }
 0x18d   : > { %v835_v33 = vsel %vm3188_vm8, %v827_v5, %v834_v25  ;;  %v928_v34 = vsel %vm3135_vm2, %v836_v26, %v927_v18  ;;  %933 = vst.msk [vmem:[#allocation2 + $0x28] sm:$0xf] %vm906_vm5, %v852_v31  ;;  %936 = vst [vmem:[#allocation2 + $0x2c] sm:$0x1] %v935_v32  ;;  %v945_v35 = vsel %vm3181_vm7, %v877_v29, %v944_v27  ;;  %v880_v39 = vshrl.u32 %v2238_v37, 16 }
 0x18e   : > { %926 = vst.msk [vmem:[#allocation2 + $0x1c] sm:$0xf] %vm906_vm5, %v835_v33  ;;  %929 = vst [vmem:[#allocation2 + $0x20] sm:$0x1] %v928_v34  ;;  %v938_v36 = vsel %vm3181_vm7, %v860_v30, %v937_v28  ;;  %v863_v41 = vshrl.u32 %v2236_v38, 16  ;;  %v883_v43 = vshll.u32 %v2238_v37, 16 }
 0x18f   : > { %946 = vst [vmem:[#allocation2 + $0x3c] sm:$0xf] %v945_v35  ;;  %939 = vst [vmem:[#allocation2 + $0x30] sm:$0xf] %v938_v36  ;;  %v882_v42 = vrot.slane %v880_v39, 7  ;;  %v866_v45 = vshll.u32 %v2236_v38, 16 }
 0x190   : > { %v865_v44 = vrot.slane %v863_v41, 7  ;;  %v878_v46 = vrot.slane %v874_v20, 4  ;;  %v861_v47 = vrot.slane %v857_v21, 4  ;;  %954 = sbr.rel (%p2135_p4) target bundleno = 407 (0x197), region = 68 }
 0x191   : > { %v885_v50 = vor.u32 %v883_v43, %v882_v42  ;;  %v887_v51 = vrot.slane %v882_v42, 4 }
 0x192   : > { %v868_v52 = vor.u32 %v866_v45, %v865_v44  ;;  %v870_v3 = vrot.slane %v865_v44, 4 }
 0x193   : > { %v886_v53 = vsel %vm3188_vm8, %v878_v46, %v885_v50  ;;  %v949_v54 = vsel %vm3135_vm2, %v887_v51, %v948_v48 }
 0x194   : > { %v869_v55 = vsel %vm3188_vm8, %v861_v47, %v868_v52  ;;  %v942_v56 = vsel %vm3135_vm2, %v870_v3, %v941_v49  ;;  %947 = vst.msk [vmem:[#allocation2 + $0x40] sm:$0xf] %vm906_vm5, %v886_v53  ;;  %950 = vst [vmem:[#allocation2 + $0x44] sm:$0x1] %v949_v54 }
 0x195   : > { %940 = vst.msk [vmem:[#allocation2 + $0x34] sm:$0xf] %vm906_vm5, %v869_v55  ;;  %943 = vst [vmem:[#allocation2 + $0x38] sm:$0x1] %v942_v56 }
 0x197 PF: > { %p2136_p3 = scmp.ne.s32.totalorder %s2763_s15, 3 }
 0x198   : > { %v2786_v14 = vmov (!%p2136_p3), 0  }
 0x199   : > { %962 = sbr.rel (%p2136_p3) target bundleno = 416 (0x1a0), region = 72  ;;  %964 = vst.msk [vmem:[#allocation2 + $0x3c] sm:$0xf] (!%p2136_p3), %vm906_vm5, %v2786_v14  ;;  %965 = vst.msk [vmem:[#allocation2 + $0x40] sm:$0xf] (!%p2136_p3), %vm906_vm5, %v2786_v14 }
 0x19a   : > { %967 = vst.msk [vmem:[#allocation2 + $0x44] sm:$0x1] (!%p2136_p3), %vm713_vm0, %v2786_v14 }
 0x1a0 PF: > { %v1002_v19 = vld [vmem:[#allocation2 + $0x18] sm:$0xf]  ;;  %v3252_v58 = vld [vmem:[#allocation2 + $0x1c] sm:$0xf]  ;;  %v986_v60 = vld [vmem:[#allocation2 + $0x10] sm:$0xf] }
 0x1a1   : > { %v2161_v59 = vcombine.low %v1002_v19, %v3252_v58  ;;  %v997_v61 = vld [vmem:[#allocation2 + $0xc] sm:$0xe]  ;;  %v3255_v62 = vld [vmem:[#allocation2 + $0x14] ss:$0 sps:$4 sm:$0x11]   ;;  %s2787_s27 = smov 64  }
 0x1a2   : > { %v2157_v63 = vcombine.low %v997_v61, %v986_v60  ;;  %v969_v0 = vld [vmem:[#allocation2 + $0x4] sm:$0xf]  ;;  %vm1119_vm9 = vcmask 1046528   ;;  %v980_v2 = vld [vmem:[#allocation2] sm:$0xe]  ;;  %v1241_v5 = vrot.slane %v3255_v62, 1 }
 0x1a3   : > { %1280 = vrot.lane.b32.xlu1 %v2161_v59, %s2787_s27  ;;  %v1303_v1 = vshll.u32 %v2161_v59, 16  ;;  %v2540_v6 = vld [vmem:[#allocation2 + $0x8] ss:$0 sps:$4 sm:$0x11]   ;;  %v2145_v7 = vcombine.low %v980_v2, %v969_v0  ;;  %v968_v8 = vld [vmem:[#allocation2] sm:$0xf] }
 0x1a4   : > { %v1240_v4 = vrot.slane %v2157_v63, 1  ;;  %v985_v9 = vld [vmem:[#allocation2 + $0xc] sm:$0xf]  ;;  %v1301_v10 = vshrl.u32 %v2161_v59, 16  ;;  %v1121_v13 = vrot.slane %v2540_v6, 1  ;;  %v3260_v15 = vcombine.low %v968_v8, %v969_v0  ;;  %s2788_s21 = smov 32  }
 0x1a5   : > { %v1120_v12 = vrot.slane %v2145_v7, 1  ;;  %v970_v16 = vld [vmem:[#allocation2 + $0xc] sm:$0xf]  ;;  %v1059_v17 = vshll.u32 %v2540_v6, 16  ;;  %v1305_v20 = vrot.slane %v1303_v1, 1  ;;  %s3661_s7 = sld [smem:[#allocation20_spill]]  ;;  %v3272_v26 = vcombine.low %v985_v9, %v986_v60 }
 0x1a6   : > { %v1242_v11 = vsel %vm1119_vm9, %v1240_v4, %v1241_v5  ;;  %v3263_v18 = vld [vmem:[#allocation2 + $0x20] ss:$0 sps:$4 sm:$0x11]   ;;  %v1052_v23 = vshrl.u32 %v3260_v15, 16  ;;  %v1054_v40 = vshll.u32 %v3260_v15, 16  ;;  %s2789_s28 = smov 96  }
 0x1a7   : > { %1252 = vrot.lane.b32.xlu0 %v1242_v11, %s2788_s21  ;;  %v1122_v22 = vsel %vm1119_vm9, %v1120_v12, %v1121_v13  ;;  %v971_v24 = vld [vmem:[#allocation2 + $0x10] sm:$0xf]  ;;  %vm1050_vm10 = vsmask.f32 7424  ;;  %v1061_v25 = vrot.slane %v1059_v17, 1  ;;  %v1308_v29 = vshll.u32 %v3263_v18, 16 }
 0x1a8   : > { %1132 = vrot.lane.b32.xlu1 %v1122_v22, %s2787_s27  ;;  %v2546_v27 = vld [vmem:[#allocation2 + $0x14] ss:$0 sps:$4 sm:$0x11]   ;;  %v1056_v28 = vrot.slane %v1054_v40, 1  ;;  %v3275_v30 = vcombine.low %v970_v16, %v971_v24  ;;  %v988_v31 = vld [vmem:[#allocation2 + $0x1c] sm:$0xf]  ;;  %v1306_v32 = vor.u32 %v1305_v20, %v1301_v10 }
 0x1a9   : > { %v1071_v33 = vshll.u32 %v2546_v27, 16  ;;  %v998_v34 = vld [vmem:[#allocation2 + $0x18] sm:$0xe]  ;;  %v981_v35 = vld [vmem:[#allocation2 + $0xc] sm:$0xe]  ;;  %v1310_v37 = vrot.slane %v1308_v29, 1 }
 0x1aa   : > { %v1057_v36 = vor.u32 %v1056_v28, %v1052_v23  ;;  %v1064_v38 = vshrl.u32 %v3275_v30, 16  ;;  %v1066_v39 = vshll.u32 %v3275_v30, 16  ;;  %v3279_v41 = vld [vmem:[#allocation2 + $0x20] ss:$0 sps:$4 sm:$0x11]   ;;  %v2158_v43 = vcombine.low %v998_v34, %v988_v31  ;;  %s3662_s23 = sld [smem:[#allocation22_spill]] }
 0x1ab   : > { %v2572_v21 = vld [vmem:[%s3661_s7 + $0x40] sm:$0xff]   ;;  %v1073_v42 = vrot.slane %v1071_v33, 1  ;;  %v2146_v44 = vcombine.low %v981_v35, %v971_v24  ;;  %v3283_v46 = vld [vmem:[#allocation2 + $0x28] sm:$0xf]  ;;  %v1244_v49 = vrot.slane %v3279_v41, 1  ;;  %v1124_v50 = vrot.slane %v2546_v27, 1 }
 0x1ac   : > { %2304 = vmatprep.subr.bf16.mxu1 %v2572_v21  ;;  %1160 = vrot.lane.b32.xlu1 %v3272_v26, %s2789_s28  ;;  %v1004_v45 = vld [vmem:[#allocation2 + $0x24] sm:$0xf]  ;;  %v1062_v47 = vsel %vm1050_vm10, %v1057_v36, %v1061_v25  ;;  %v1068_v48 = vrot.slane %v1066_v39, 1  ;;  %v987_v51 = vld [vmem:[#allocation2 + $0x18] sm:$0xf]  ;;  %v1243_v52 = vrot.slane %v2158_v43, 1  ;;  %v1311_v55 = vsel %vm1050_vm10, %v1306_v32, %v1310_v37 }
 0x1ad   : > { %1099 = vrot.lane.b32.xlu0 %v1062_v47, %s2788_s21  ;;  %v1123_v3 = vrot.slane %v2146_v44, 1  ;;  %v2162_v53 = vcombine.low %v1004_v45, %v3283_v46  ;;  %v972_v54 = vld [vmem:[#allocation2 + $0x18] sm:$0xf]  ;;  %v3290_v57 = vld [vmem:[#allocation2 + $0x2c] ss:$0 sps:$4 sm:$0x11]   ;;  %v3297_v63 = vcombine.low %v987_v51, %v988_v31 }
 0x1ae   : > { %v1069_v56 = vor.u32 %v1068_v48, %v1064_v38  ;;  %v973_v14 = vld [vmem:[#allocation2 + $0x1c] sm:$0xf]  ;;  %v2573_v19 = vld [vmem:[%s3661_s7] sm:$0xff]   ;;  %v1181_v60 = vshrl.u32 %v3272_v26, 16  ;;  %v1320_v4 = vshll.u32 %v3290_v57, 16  ;;  %v1183_v6 = vshll.u32 %v3272_v26, 16 }
 0x1af   : > { %v1315_v59 = vshll.u32 %v2162_v53, 16  ;;  %v3299_v0 = vld [vmem:[#allocation2 + $0x20] ss:$0 sps:$4 sm:$0x11]   ;;  %2305 = vmatpush3.bf16.msra.mxu1 %v2573_v19  ;;  %v1313_v1 = vshrl.u32 %v2162_v53, 16  ;;  %v3304_v5 = vcombine.low %v972_v54, %v973_v14  ;;  %v1245_v7 = vsel %vm1119_vm9, %v1243_v52, %v1244_v49  ;;  %v2574_v20 = vld [vmem:[%s3661_s7 + $0x48] sm:$0xff]  }
 0x1b0   : > { %v1074_v61 = vsel %vm1050_vm10, %v1069_v56, %v1073_v42  ;;  %v1125_v8 = vsel %vm1119_vm9, %v1123_v3, %v1124_v50  ;;  %v1083_v9 = vshll.u32 %v3299_v0, 16  ;;  %v990_v10 = vld [vmem:[#allocation2 + $0x28] sm:$0xf]  ;;  %v999_v11 = vld [vmem:[#allocation2 + $0x24] sm:$0xe]  ;;  %v1195_v12 = vshll.u32 %v3297_v63, 16  ;;  %2306 = vmatprep.subr.bf16.mxu1 %v2574_v20 }
 0x1b1   : > { %1348 = vrot.lane.b32.xlu0 %v1311_v55, %s2789_s28  ;;  %1101 = vrot.lane.b32.xlu1 %v1074_v61, %s2788_s21  ;;  %v1317_v2 = vrot.slane %v1315_v59, 1  ;;  %v1076_v13 = vshrl.u32 %v3304_v5, 16  ;;  %v1078_v16 = vshll.u32 %v3304_v5, 16  ;;  %v982_v17 = vld [vmem:[#allocation2 + $0x18] sm:$0xe]  ;;  %v2575_v23 = vld [vmem:[%s3661_s7 + $0x8] sm:$0xff]   ;;  %v2159_v27 = vcombine.low %v999_v11, %v990_v10 }
 0x1b2   : > { %v3316_v21 = vld [vmem:[#allocation2 + $0x2c] ss:$0 sps:$4 sm:$0x11]   ;;  %v1006_v22 = vld [vmem:[#allocation2 + $0x30] sm:$0xf]  ;;  %v1322_v24 = vrot.slane %v1320_v4, 1  ;;  %v2147_v33 = vcombine.low %v982_v17, %v973_v14 }
 0x1b3   : > { %v1318_v40 = vor.u32 %v1317_v2, %v1313_v1  ;;  %v1080_v25 = vrot.slane %v1078_v16, 1  ;;  %v3323_v28 = vld [vmem:[#allocation2 + $0x34] sm:$0xf]  ;;  %v1185_v31 = vrot.slane %v1183_v6, 1  ;;  %v1085_v32 = vrot.slane %v1083_v9, 1  ;;  %2307 = vmatpush3.bf16.msra.mxu1 %v2575_v23  ;;  %v2578_v48 = vld [vmem:[%s3661_s7 + $0x58] sm:$0xff]  }
 0x1b4   : > { %v2576_v29 = vld [vmem:[%s3661_s7 + $0x50] sm:$0xff]   ;;  %v3329_v34 = vcombine.low %v1006_v22, %v3323_v28  ;;  %v989_v35 = vld [vmem:[#allocation2 + $0x24] sm:$0xf]  ;;  %v3331_v37 = vld [vmem:[#allocation2 + $0x38] ss:$0 sps:$4 sm:$0x11]  }
 0x1b5   : > { %1254 = vrot.lane.b32.xlu0 %v1245_v7, %s2788_s21  ;;  %1134 = vrot.lane.b32.xlu1 %v1125_v8, %s2787_s27  ;;  %v1081_v36 = vor.u32 %v1080_v25, %v1076_v13  ;;  %v974_v38 = vld [vmem:[#allocation2 + $0x24] sm:$0xf]  ;;  %v2577_v39 = vld [vmem:[%s3661_s7 + $0x10] sm:$0xff]   ;;  %v1193_v42 = vshrl.u32 %v3297_v63, 16  ;;  %v3337_v43 = vrot.slane %v1195_v12, 1  ;;  %v3340_v45 = vcombine.low %v989_v35, %v990_v10  ;;  %s3663_s1 = sld [smem:[#allocation21_spill]] }
 0x1b6   : > { %v1327_v44 = vshll.u32 %v3329_v34, 16  ;;  %v975_v47 = vld [vmem:[#allocation2 + $0x28] sm:$0xf]  ;;  %2308 = vmatprep.subr.bf16.mxu1 %v2576_v29  ;;  %v1323_v49 = vsel %vm1050_vm10, %v1318_v40, %v1322_v24  ;;  %v1246_v50 = vrot.slane %v2159_v27, 1  ;;  %v1247_v51 = vrot.slane %v3316_v21, 1  ;;  %v2580_v4 = vld [vmem:[%s3661_s7 + $0x60] sm:$0xff]  }
 0x1b7   : > { %v1127_v52 = vrot.slane %v3299_v0, 1  ;;  %v1086_v3 = vsel %vm1050_vm10, %v1081_v36, %v1085_v32  ;;  %v1126_v54 = vrot.slane %v2147_v33, 1  ;;  %v1207_v55 = vshll.u32 %v3340_v45, 16  ;;  %v3355_v14 = vld [vmem:[#allocation2 + $0x2c] ss:$0 sps:$4 sm:$0x11]   ;;  %2309 = vmatpush3.bf16.msra.mxu1 %v2577_v39 }
 0x1b8   : > { %v3353_v56 = vcombine.low %v974_v38, %v975_v47  ;;  %v992_v19 = vld [vmem:[#allocation2 + $0x34] sm:$0xf]  ;;  %v1000_v59 = vld [vmem:[#allocation2 + $0x30] sm:$0xe]  ;;  %v1325_v61 = vshrl.u32 %v3329_v34, 16  ;;  %v1329_v1 = vrot.slane %v1327_v44, 1  ;;  %2310 = vmatprep.subr.bf16.mxu1 %v2578_v48  ;;  %v1248_v10 = vsel %vm1119_vm9, %v1246_v50, %v1247_v51 }
 0x1b9   : > { %1282 = vrot.lane.b32.xlu0 %v2162_v53, %s2787_s27  ;;  %1162 = vrot.lane.b32.xlu1 %v3297_v63, %s2789_s28  ;;  %v2579_v53 = vld [vmem:[%s3661_s7 + $0x18] sm:$0xff]   ;;  %v1332_v0 = vshll.u32 %v3331_v37, 16  ;;  %v1095_v7 = vshll.u32 %v3355_v14, 16  ;;  %v983_v8 = vld [vmem:[#allocation2 + $0x24] sm:$0xe]  ;;  %v1128_v11 = vsel %vm1119_vm9, %v1126_v54, %v1127_v52  ;;  %v2160_v16 = vcombine.low %v1000_v59, %v992_v19  ;;  %v2582_v27 = vld [vmem:[%s3661_s7 + $0x68] sm:$0xff]  }
 0x1ba   : > { %v1090_v2 = vshll.u32 %v3353_v56, 16  ;;  %v1088_v6 = vshrl.u32 %v3353_v56, 16  ;;  %v1008_v9 = vld [vmem:[#allocation2 + $0x3c] sm:$0xf]  ;;  %v3374_v17 = vld [vmem:[#allocation2 + $0x40] sm:$0xf]  ;;  %v2148_v23 = vcombine.low %v983_v8, %v975_v47  ;;  %v1186_v32 = vor.u32 %v1185_v31, %v1181_v60 }
 0x1bb   : > { %v3372_v13 = vld [vmem:[#allocation2 + $0x38] ss:$0 sps:$4 sm:$0x11]   ;;  %v1205_v20 = vshrl.u32 %v3340_v45, 16  ;;  %v1209_v22 = vrot.slane %v1207_v55, 1  ;;  %v2164_v40 = vcombine.low %v1008_v9, %v3374_v17  ;;  %2311 = vmatpush3.bf16.msra.mxu1 %v2579_v53  ;;  %v2581_v24 = vld [vmem:[%s3661_s7 + $0x20] sm:$0xff]   ;;  %v1330_v33 = vor.u32 %v1329_v1, %v1325_v61 }
 0x1bc   : > { %v1092_v12 = vrot.slane %v1090_v2, 1  ;;  %v991_v25 = vld [vmem:[#allocation2 + $0x30] sm:$0xf]  ;;  %2312 = vmatprep.subr.bf16.mxu1 %v2580_v4  ;;  %v1188_v29 = vshll.u32 %v3255_v62, 16  ;;  %v1334_v35 = vrot.slane %v1332_v0, 1  ;;  %v1097_v36 = vrot.slane %v1095_v7, 1 }
 0x1bd   : > { %1350 = vrot.lane.b32.xlu0 %v1323_v49, %s2789_s28  ;;  %1103 = vrot.lane.b32.xlu1 %v1086_v3, %s2788_s21  ;;  %v1130_v38 = vrot.slane %v3355_v14, 1  ;;  %v1249_v44 = vrot.slane %v2160_v16, 1  ;;  %v1250_v47 = vrot.slane %v3372_v13, 1  ;;  %v1129_v48 = vrot.slane %v2148_v23, 1  ;;  %v2583_v62 = vld [vmem:[%s3661_s7 + $0x28] sm:$0xff]   ;;  %v2584_v51 = vld [vmem:[%s3661_s7 + $0x70] sm:$0xff]  }
 0x1be   : > { %v1093_v39 = vor.u32 %v1092_v12, %v1088_v6  ;;  %v1339_v26 = vshll.u32 %v2164_v40, 16  ;;  %v2152_v60 = vcombine.low %v991_v25, %v992_v19  ;;  %v3394_v31 = vld [vmem:[#allocation2 + $0x44] ss:$0 sps:$4 sm:$0x11]   ;;  %v1337_v49 = vshrl.u32 %v2164_v40, 16  ;;  %v2585_v54 = vld [vmem:[%s3661_s7 + $0x30] sm:$0xff]  }
 0x1bf   : > { %2313 = vmatpush3.bf16.msra.mxu1 %v2581_v24  ;;  %v1190_v50 = vrot.slane %v1188_v29, 1  ;;  %v1335_v55 = vsel %vm1050_vm10, %v1330_v33, %v1334_v35  ;;  %v1015_v19 = vld [vmem:[#allocation2 + $0x24] sm:$0xe]  ;;  %v1344_v59 = vshll.u32 %v3394_v31, 16  ;;  %v1251_v61 = vsel %vm1119_vm9, %v1249_v44, %v1250_v47  ;;  %v1016_v0 = vld [vmem:[#allocation2 + $0x30] sm:$0xe] }
 0x1c0   : > { %2314 = vmatprep.subr.bf16.mxu1 %v2582_v27  ;;  %v1217_v52 = vshrl.u32 %v2152_v60, 16  ;;  %v1219_v3 = vshll.u32 %v2152_v60, 16  ;;  %v1098_v14 = vsel %vm1050_vm10, %v1093_v39, %v1097_v36  ;;  %v1131_v1 = vsel %vm1119_vm9, %v1129_v48, %v1130_v38  ;;  %v2588_v63 = vld [vmem:[%s3661_s7 + $0x38] sm:$0xff]   ;;  %v2589_v16 = vld [vmem:[%s3661_s7 + $0x88] sm:$0xff]   ;;  %s3664_s29 = sld [smem:[#allocation23_spill]]  ;;  %s2247_s5 = sshll.u32 %s2763_s15, 3 }
 0x1c1   : > { %1256 = vrot.lane.b32.xlu0 %v1248_v10, %s2788_s21  ;;  %1136 = vrot.lane.b32.xlu1 %v1128_v11, %s2787_s27  ;;  %v3409_v53 = vsel %vm1050_vm10, %v1186_v32, %v1190_v50  ;;  %v2170_v2 = vcombine.low %v1015_v19, %v3283_v46  ;;  %v1198_v6 = vor.u32 %v3337_v43, %v1193_v42  ;;  %v1200_v7 = vshll.u32 %v3279_v41, 16  ;;  %v2586_v10 = vld [vmem:[%s3661_s7 + $0x78] sm:$0xff]   ;;  %v2587_v46 = vld [vmem:[%s3661_s7 + $0x80] sm:$0xff]   ;;  %s2214_s24 = sshll.u32 %s2767_s16, 5  ;;  %s3665_s15 = sld [smem:[#allocation15_spill]] }
 0x1c2   : > { %v1221_v4 = vrot.slane %v1219_v3, 1  ;;  %v1346_v9 = vrot.slane %v1344_v59, 1  ;;  %v2171_v12 = vcombine.low %v1016_v0, %v3323_v28  ;;  %v1210_v41 = vor.u32 %v1209_v22, %v1205_v20  ;;  %v1014_v23 = vld [vmem:[#allocation2 + $0x18] sm:$0xe]  ;;  %2384 = vmatprep.subr.bf16.mxu0 %v2587_v46  ;;  %v1017_v32 = vld [vmem:[#allocation2 + $0x3c] sm:$0xe] }
 0x1c3   : > { %2315 = vmatpush3.bf16.msra.mxu1 %v2583_v62  ;;  %v1202_v11 = vrot.slane %v1200_v7, 1  ;;  %v1212_v42 = vshll.u32 %v3316_v21, 16  ;;  %v1371_v43 = vrot.slane %v2170_v2, 1  ;;  %v1224_v25 = vshll.u32 %v3372_v13, 16  ;;  %2385 = vmatpush3.bf16.msra.mxu0 %v2587_v46  ;;  %s3666_s22 = sld [smem:[#allocation24_spill]]  ;;  %s1921_s30 = scalar_lea.sflag [#allocation5], %s3077_s17 }
 0x1c4   : > { %2316 = vmatprep.subr.bf16.mxu1 %v2584_v51  ;;  %v1222_v24 = vor.u32 %v1221_v4, %v1217_v52  ;;  %v2169_v21 = vcombine.low %v1014_v23, %v3252_v58  ;;  %v1369_v20 = vrot.slane %v3263_v18, 1  ;;  %v1374_v29 = vrot.slane %v2171_v12, 1  ;;  %2386 = vmatprep.subr.bf16.mxu0 %v2589_v16  ;;  %s2790_s25 = smov [#allocation8]  }
 0x1c5   : > { %1284 = vrot.lane.b32.xlu0 %v3329_v34, %s2787_s27  ;;  %1164 = vrot.lane.b32.xlu1 %v3340_v45, %s2789_s28  ;;  %v1341_v34 = vrot.slane %v1339_v26, 1  ;;  %v1203_v28 = vsel %vm1050_vm10, %v1198_v6, %v1202_v11  ;;  %v1214_v22 = vrot.slane %v1212_v42, 1  ;;  %v1226_v27 = vrot.slane %v1224_v25, 1 }
 0x1c6   : > { %v1368_v33 = vrot.slane %v2169_v21, 1  ;;  %v1375_v13 = vrot.slane %v3331_v37, 1  ;;  %vm1380_vm11 = vcmask 261120   ;;  %v2172_v18 = vcombine.low %v1017_v32, %v3374_v17 }
 0x1c7   : > { %2317 = vmatpush3.bf16.msra.mxu1 %v2585_v54  ;;  %v1342_v8 = vor.u32 %v1341_v34, %v1337_v49  ;;  %v1215_v35 = vsel %vm1050_vm10, %v1210_v41, %v1214_v22  ;;  %v3451_v36 = vsel %vm1050_vm10, %v1222_v24, %v1226_v27  ;;  %2387 = vmatpush3.bf16.msra.mxu0 %v2589_v16  ;;  %v1378_v39 = vrot.slane %v3394_v31, 1  ;;  %p3667_p5 = scmp.ne.s32.totalorder %s3665_s15, 0 }
 0x1c8   : > { %2318 = vmatprep.subr.bf16.mxu1 %v2586_v10  ;;  %v1370_v58 = vsel %vm1119_vm9, %v1368_v33, %v1369_v20  ;;  %v1376_v38 = vsel %vm1119_vm9, %v1374_v29, %v1375_v13  ;;  %v1377_v37 = vrot.slane %v2172_v18, 1  ;;  %vm1389_vm12 = vcmask 523264  }
 0x1c9   : > { %1352 = vrot.lane.b32.xlu0 %v1335_v55, %s2789_s28  ;;  %1105 = vrot.lane.b32.xlu1 %v1098_v14, %s2788_s21  ;;  %v1347_v45 = vsel %vm1050_vm10, %v1342_v8, %v1346_v9  ;;  %vm1398_vm13 = vcmask 785408  }
 0x1ca   : > { %2388 = vmatprep.mubr.msk.bf16.mxu0 %vm1380_vm11, %v1370_v58  ;;  %v1379_v44 = vsel %vm1119_vm9, %v1377_v37, %v1378_v39 }
 0x1cb   : > { %2319 = vmatpush3.bf16.msra.mxu1 %v2588_v63 }
 0x1cd   : > { %1258 = vrot.lane.b32.xlu0 %v1251_v61, %s2788_s21  ;;  %1138 = vrot.lane.b32.xlu1 %v1131_v1, %s2787_s27  ;;  %s2657_s21 = sshll.u32 %s2790_s25, 4  ;;  %s2658_s21 = int_to_ptr.vmem [resolvable:$false] %s2657_s21 }
 0x1d1   : > { %1286 = vrot.lane.b32.xlu0 %v2164_v40, %s2787_s27  ;;  %1166 = vrot.lane.b32.xlu1 %v2152_v60, %s2789_s28  ;;  %v1372_v40 = vrot.slane %v3290_v57, 1 }
 0x1d3   : > { %v1373_v57 = vsel %vm1119_vm9, %v1371_v43, %v1372_v40  ;;  %v2591_v40 = vld [vmem:[%s3662_s23] sm:$0xff]  }
 0x1d4   : > { %2389 = vmatmul.mubr.msk.bf16.vlgmr.msra.gmra.mrb[12].mxu0 %vm1380_vm11, %v1373_v57  ;;  %2396 = vmatprep.subr.bf16.mxu1 %v2591_v40 }
 0x1d5   : > { %1354 = vrot.lane.b32.xlu0 %v1347_v45, %s2789_s28  ;;  %2392 = vmatprep.mubr.msk.bf16.mxu0 %vm1380_vm11, %v1376_v38  ;;  %v2173_v38 = vld [vmem:[%s3663_s1] ss:$0 sm:$0xff]  ;;  %s1934_s28 = sadd.s32 %s2247_s5, %s2214_s24 }
 0x1d6   : > { %s2215_s16 = sshll.u32 %s1934_s28, 6 }
 0x1d7   : > { %s3521_s6 = scalar_lea.hbm %s3666_s22, %s2215_s16 }
 0x1dc   : > { %2393 = vmatmul.mubr.msk.bf16.gmra.mrb[16].mxu0 %vm1380_vm11, %v1379_v44 }
 0x215   : > { %v1281_v47 = vpop.permute.xlu1 %1280 }
 0x219   : > { %v1253_v17 = vpop.permute.xlu0 %1252 }
 0x21a   : > { %v1133_v48 = vpop.permute.xlu1 %1132  ;;  %v1413_v60 = vsel %vm1380_vm11, %v3409_v53, %v1253_v17 }
 0x21b   : > { %v1424_v52 = vsel %vm1389_vm12, %v1413_v60, %v1281_v47 }
 0x21e   : > { %v1161_v62 = vpop.permute.xlu1 %1160 }
 0x21f   : > { %v1100_v26 = vpop.permute.xlu0 %1099 }
 0x220   : > { %v1382_v49 = vsel %vm1380_vm11, %v3260_v15, %v1100_v26 }
 0x221   : > { %v1391_v50 = vsel %vm1389_vm12, %v1382_v49, %v1133_v48 }
 0x222   : > { %v1400_v54 = vsel %vm1398_vm13, %v1391_v50, %v1161_v62 }
 0x223   : > { %v1349_v31 = vpop.permute.xlu0 %1348  ;;  %v1102_v51 = vpop.permute.xlu1 %1101 }
 0x224   : > { %v1432_v3 = vsel %vm1398_vm13, %v1424_v52, %v1349_v31  ;;  %v1384_v15 = vsel %vm1380_vm11, %v3275_v30, %v1102_v51 }
 0x225   : > { %1638 = vmatprep.mubr.bf16.mxu1 %v1432_v3 }
 0x226   : > { %1639 = vmatmul.mubr.bf16.vlgmr.msra.gmra.mrb[0].mxu1 %v1400_v54 }
 0x227   : > { %v1255_v55 = vpop.permute.xlu0 %1254  ;;  %v1135_v14 = vpop.permute.xlu1 %1134  ;;  %2397 = vmatpush3.bf16.msra.mxu1 %v2591_v40  ;;  %v2249_v40 = vld [vmem:[%s3083_s26] sm:$0xff]  }
 0x228   : > { %v1416_v34 = vsel %vm1380_vm11, %v1203_v28, %v1255_v55  ;;  %v1393_v0 = vsel %vm1389_vm12, %v1384_v15, %v1135_v14 }
 0x22b   : > { %v1283_v53 = vpop.permute.xlu0 %1282  ;;  %v1163_v19 = vpop.permute.xlu1 %1162 }
 0x22c   : > { %v1426_v59 = vsel %vm1389_vm12, %v1416_v34, %v1283_v53  ;;  %v1403_v4 = vsel %vm1398_vm13, %v1393_v0, %v1163_v19 }
 0x22f   : > { %v1351_v61 = vpop.permute.xlu0 %1350  ;;  %v1104_v1 = vpop.permute.xlu1 %1103 }
 0x230   : > { %v1435_v2 = vsel %vm1398_vm13, %v1426_v59, %v1351_v61  ;;  %v1386_v30 = vsel %vm1380_vm11, %v3304_v5, %v1104_v1 }
 0x231   : > { %1646 = vmatprep.mubr.bf16.mxu1 %v1435_v2 }
 0x232   : > { %1647 = vmatmul.mubr.bf16.gmra.mrb[4].mxu1 %v1403_v4 }
 0x233   : > { %v1257_v6 = vpop.permute.xlu0 %1256  ;;  %v1137_v7 = vpop.permute.xlu1 %1136 }
 0x234   : > { %v1419_v10 = vsel %vm1380_vm11, %v1215_v35, %v1257_v6  ;;  %v1395_v63 = vsel %vm1389_vm12, %v1386_v30, %v1137_v7 }
 0x237   : > { %v1285_v8 = vpop.permute.xlu0 %1284  ;;  %v1165_v9 = vpop.permute.xlu1 %1164 }
 0x238   : > { %v1428_v46 = vsel %vm1389_vm12, %v1419_v10, %v1285_v8  ;;  %v1406_v42 = vsel %vm1398_vm13, %v1395_v63, %v1165_v9 }
 0x23b   : > { %v1353_v11 = vpop.permute.xlu0 %1352  ;;  %v1106_v12 = vpop.permute.xlu1 %1105 }
 0x23c   : > { %v1438_v41 = vsel %vm1398_vm13, %v1428_v46, %v1353_v11  ;;  %v1388_v5 = vsel %vm1380_vm11, %v3353_v56, %v1106_v12  ;;  %v2592_v56 = vld [vmem:[%s3662_s23 + $0x8] sm:$0xff]  }
 0x23d   : > { %1654 = vmatprep.mubr.bf16.mxu1 %v1438_v41  ;;  %2398 = vmatprep.subr.bf16.mxu1 %v2592_v56 }
 0x23e   : > { %1655 = vmatmul.mubr.bf16.gmra.mrb[8].mxu1 %v1406_v42 }
 0x23f   : > { %v1259_v43 = vpop.permute.xlu0 %1258  ;;  %v1139_v16 = vpop.permute.xlu1 %1138  ;;  %2399 = vmatpush3.bf16.msra.mxu1 %v2592_v56  ;;  %v2196_v56 = vld [vmem:[%s3664_s29] ss:$0 sm:$0xff]  ;;  %s2659_s29 = scalar_lea.vmem %s2658_s21, 1024 }
 0x240   : > { %v1422_v23 = vsel %vm1380_vm11, %v3451_v36, %v1259_v43  ;;  %v1397_v21 = vsel %vm1389_vm12, %v1388_v5, %v1139_v16 }
 0x243   : > { %v1287_v28 = vpop.permute.xlu0 %1286  ;;  %v1167_v24 = vpop.permute.xlu1 %1166 }
 0x244   : > { %v1430_v25 = vsel %vm1389_vm12, %v1422_v23, %v1287_v28  ;;  %v1409_v22 = vsel %vm1398_vm13, %v1397_v21, %v1167_v24 }
 0x247   : > { %v1355_v45 = vpop.permute.xlu0 %1354 }
 0x248   : > { %v1441_v20 = vsel %vm1398_vm13, %v1430_v25, %v1355_v45 }
 0x249   : > { %1662 = vmatprep.mubr.bf16.mxu1 %v1441_v20 }
 0x24a   : > { %1663 = vmatmul.mubr.bf16.gmra.mrb[12].mxu1 %v1409_v22  ;;  %v2284_v22 = vld [vmem:[%s3083_s26 + $0x8] sm:$0xff]  }
 0x2a7   : > { %v2390_v27 = vpop.f32.mrb[12].mxu0 }
 0x2a8   : > { %v1705_v29 = vpop.f32.mrb[13].mxu0 }
 0x2a9   : > { %v2391_v32 = vpop.f32.mrb[14].mxu0 }
 0x2aa   : > { %v1708_v33 = vpop.f32.mrb[15].mxu0 }
 0x2af   : > { %v2394_v35 = vpop.f32.mrb[16].mxu0 }
 0x2b0   : > { %v1721_v13 = vpop.f32.mrb[17].mxu0 }
 0x2b1   : > { %v2395_v36 = vpop.f32.mrb[18].mxu0 }
 0x2b2   : > { %v1724_v58 = vpop.f32.mrb[19].mxu0 }
 0x2f9   : > { %v2320_v18 = vpop.f32.mrb[0].mxu1 }
 0x2fa   : > { %v2321_v57 = vpop.f32.mrb[1].mxu1 }
 0x2fb   : > { %v2322_v37 = vadd.f32 %v2321_v57, %v2320_v18  ;;  %v2323_v39 = vpop.f32.mrb[2].mxu1  ;;  %v2251_v18 = vunpack.c.h.bf16 %v2249_v40 }
 0x2fc   : > { %v2324_v44 = vpop.f32.mrb[3].mxu1 }
 0x2fd   : > { %v2325_v47 = vadd.f32 %v2324_v44, %v2323_v39  ;;  %v1641_v17 = vadd.f32 %v2322_v37, %v2173_v38 }
 0x2ff   : > { %v1706_v48 = vadd.f32 %v1705_v29, %v1641_v17  ;;  %v1644_v62 = vadd.f32 %v2325_v47, %v2173_v38 }
 0x301   : > { %v1709_v26 = vadd.f32 %v1708_v33, %v1644_v62  ;;  %v1736_v60 = vmax.f32 %v1706_v48, 0.0 }
 0x303   : > { %v1737_v49 = vmax.f32 %v1709_v26, 0.0 }
 0x305   : > { %v1744_v50 = vpack.c.bf16 %v1737_v49, %v1736_v60  ;;  %v2326_v31 = vpop.f32.mrb[4].mxu1 }
 0x306   : > { %v2327_v51 = vpop.f32.mrb[5].mxu1 }
 0x307   : > { %v2328_v52 = vadd.f32 %v2327_v51, %v2326_v31  ;;  %v2329_v3 = vpop.f32.mrb[6].mxu1  ;;  %2400 = vmatprep.mubr.msk.bf16.mxu1 %vm1380_vm11, %v1744_v50  ;;  %v2286_v31 = vld [vmem:[%s3083_s26 + $0x18] sm:$0xff]   ;;  %v2285_v51 = vld [vmem:[%s3083_s26 + $0x10] sm:$0xff]   ;;  %s1937_s26 = sshll.u32 %s3242_s4, 4  ;;  %s3523_s26 = int_to_ptr.vmem [resolvable:$true] %s1937_s26 }
 0x308   : > { %v2330_v54 = vpop.f32.mrb[7].mxu1  ;;  %s2653_s1 = scalar_lea.vmem %s3523_s26, 512  ;;  %p2660_p1 = scmp.lt.s32.totalorder %s3523_s26, %s2658_s21 }
 0x309   : > { %v1649_v55 = vadd.f32 %v2328_v52, %v2173_v38  ;;  %v2331_v14 = vadd.f32 %v2330_v54, %v2329_v3  ;;  %v2262_v52 = vunpack.c.l.bf16 %v2286_v31  ;;  %v2258_v54 = vunpack.c.l.bf16 %v2285_v51  ;;  %p2654_p7 = scmp.ne.s32.totalorder %s3523_s26, %s2653_s1  ;;  %p2661_p6 = scmp.lt.s32.totalorder %s2659_s29, %s2653_s1 }
 0x30b   : > { %v1714_v53 = vadd.f32 %v2390_v27, %v1649_v55  ;;  %v1652_v19 = vadd.f32 %v2331_v14, %v2173_v38  ;;  %v2254_v27 = vunpack.c.l.bf16 %v2284_v22  ;;  %p2655_p9 = pnand %p2654_p7, %p3667_p5  ;;  %p2662_p0 = por %p2661_p6, %p2660_p1 }
 0x30d   : > { %v1717_v15 = vadd.f32 %v2391_v32, %v1652_v19  ;;  %v1738_v34 = vmax.f32 %v1714_v53, 0.0  ;;  %v2250_v32 = vunpack.c.l.bf16 %v2249_v40  ;;  %v2263_v53 = vunpack.c.h.bf16 %v2286_v31  ;;  %p2656_p12 = pneg %p2655_p9 }
 0x30f   : > { %v1739_v59 = vmax.f32 %v1717_v15, 0.0  ;;  %p2663_p2 = pnand %p2662_p0, %p2656_p12 }
 0x311   : > { %v1745_v61 = vpack.c.bf16 %v1739_v59, %v1738_v34  ;;  %v2332_v1 = vpop.f32.mrb[8].mxu1  ;;  %v2259_v34 = vunpack.c.h.bf16 %v2285_v51 }
 0x312   : > { %v2333_v0 = vpop.f32.mrb[9].mxu1 }
 0x313   : > { %v2334_v2 = vadd.f32 %v2333_v0, %v2332_v1  ;;  %v2335_v4 = vpop.f32.mrb[10].mxu1  ;;  %2401 = vmatmul.mubr.msk.bf16.vlgmr.msra.gmra.mrb[16].mxu1 %vm1380_vm11, %v1745_v61 }
 0x314   : > { %v2336_v6 = vpop.f32.mrb[11].mxu1 }
 0x315   : > { %v2337_v7 = vadd.f32 %v2336_v6, %v2335_v4  ;;  %v1657_v8 = vadd.f32 %v2334_v2, %v2173_v38 }
 0x317   : > { %v1722_v9 = vadd.f32 %v1721_v13, %v1657_v8  ;;  %v1660_v30 = vadd.f32 %v2337_v7, %v2173_v38 }
 0x319   : > { %v1725_v10 = vadd.f32 %v1724_v58, %v1660_v30  ;;  %v1740_v46 = vmax.f32 %v1722_v9, 0.0  ;;  %v2255_v58 = vunpack.c.h.bf16 %v2284_v22 }
 0x31b   : > { %v1741_v11 = vmax.f32 %v1725_v10, 0.0 }
 0x31d   : > { %v1746_v12 = vpack.c.bf16 %v1741_v11, %v1740_v46  ;;  %v2338_v63 = vpop.f32.mrb[12].mxu1 }
 0x31e   : > { %v2339_v41 = vpop.f32.mrb[13].mxu1 }
 0x31f   : > { %v2340_v42 = vadd.f32 %v2339_v41, %v2338_v63  ;;  %v2341_v43 = vpop.f32.mrb[14].mxu1  ;;  %2404 = vmatprep.mubr.msk.bf16.mxu1 %vm1380_vm11, %v1746_v12 }
 0x320   : > { %v2342_v16 = vpop.f32.mrb[15].mxu1 }
 0x321   : > { %v1665_v28 = vadd.f32 %v2340_v42, %v2173_v38  ;;  %v2343_v5 = vadd.f32 %v2342_v16, %v2341_v43 }
 0x323   : > { %v1730_v23 = vadd.f32 %v2394_v35, %v1665_v28  ;;  %v1668_v24 = vadd.f32 %v2343_v5, %v2173_v38 }
 0x325   : > { %v1733_v25 = vadd.f32 %v2395_v36, %v1668_v24  ;;  %v1742_v45 = vmax.f32 %v1730_v23, 0.0 }
 0x327   : > { %v1743_v21 = vmax.f32 %v1733_v25, 0.0 }
 0x329   : > { %v1747_v20 = vpack.c.bf16 %v1743_v21, %v1742_v45 }
 0x32b   : > { %2405 = vmatmul.mubr.msk.bf16.gmra.mrb[20].mxu1 %vm1380_vm11, %v1747_v20 }
 0x3e6   : > { %v2402_v29 = vpop.f32.mrb[16].mxu1 }
 0x3e7   : > { %v1826_v33 = vadd.f32 %v2402_v29, %v2196_v56  ;;  %v1817_v13 = vpop.f32.mrb[17].mxu1 }
 0x3e8   : > { %v1818_v35 = vadd.f32 %v2196_v56, %v1817_v13  ;;  %v2403_v36 = vpop.f32.mrb[18].mxu1 }
 0x3e9   : > { %v1866_v57 = vadd.f32 %v2254_v27, %v1826_v33  ;;  %v1829_v38 = vadd.f32 %v2403_v36, %v2196_v56  ;;  %v1820_v37 = vpop.f32.mrb[19].mxu1 }
 0x3ea   : > { %v1864_v39 = vadd.f32 %v2250_v32, %v1818_v35  ;;  %v1821_v44 = vadd.f32 %v2196_v56, %v1820_v37 }
 0x3eb   : > { %v1867_v47 = vadd.f32 %v2255_v58, %v1829_v38  ;;  %v1874_v48 = vmax.f32 %v1866_v57, 0.0 }
 0x3ec   : > { %v1865_v17 = vadd.f32 %v2251_v18, %v1821_v44  ;;  %v1872_v26 = vmax.f32 %v1864_v39, 0.0 }
 0x3ed   : > { %v1875_v62 = vmax.f32 %v1867_v47, 0.0 }
 0x3ee   : > { %v1873_v60 = vmax.f32 %v1865_v17, 0.0 }
 0x3ef   : > { %v2272_v49 = vpack.c.bf16 %v1875_v62, %v1874_v48 }
 0x3f0   : > { %v2267_v50 = vpack.c.bf16 %v1873_v60, %v1872_v26 }
 0x3f1   : > { %2287 = vst [vmem:[%s3242_s4 + $0x8] sm:$0xff] %v2272_v49  }
 0x3f2   : > { %2268 = vst [vmem:[%s3242_s4] sm:$0xff] %v2267_v50  }
 0x3fe   : > { %v2406_v3 = vpop.f32.mrb[20].mxu1 }
 0x3ff   : > { %v1842_v55 = vadd.f32 %v2406_v3, %v2196_v56  ;;  %v1833_v14 = vpop.f32.mrb[21].mxu1 }
 0x400   : > { %v1834_v19 = vadd.f32 %v2196_v56, %v1833_v14  ;;  %v2407_v15 = vpop.f32.mrb[22].mxu1 }
 0x401   : > { %v1870_v59 = vadd.f32 %v2262_v52, %v1842_v55  ;;  %v1845_v61 = vadd.f32 %v2407_v15, %v2196_v56  ;;  %v1836_v1 = vpop.f32.mrb[23].mxu1 }
 0x402   : > { %v1868_v0 = vadd.f32 %v2258_v54, %v1834_v19  ;;  %v1837_v2 = vadd.f32 %v2196_v56, %v1836_v1 }
 0x403   : > { %v1871_v4 = vadd.f32 %v2263_v53, %v1845_v61  ;;  %v1878_v7 = vmax.f32 %v1870_v59, 0.0 }
 0x404   : > { %v1869_v6 = vadd.f32 %v2259_v34, %v1837_v2  ;;  %v1876_v9 = vmax.f32 %v1868_v0, 0.0 }
 0x405   : > { %v1879_v8 = vmax.f32 %v1871_v4, 0.0 }
 0x406   : > { %v1877_v30 = vmax.f32 %v1869_v6, 0.0 }
 0x407   : > { %v2282_v10 = vpack.c.bf16 %v1879_v8, %v1878_v7 }
 0x408   : > { %v2277_v46 = vpack.c.bf16 %v1877_v30, %v1876_v9 }
 0x409   : > { %2289 = vst [vmem:[%s3242_s4 + $0x18] sm:$0xff] %v2282_v10  }
 0x40a   : > { %2288 = vst [vmem:[%s3242_s4 + $0x10] sm:$0xff] %v2277_v46  }
 0x40b   : > { %2666 = shalt.err (!%p2663_p2)
}
 0x40c   : > { %s2667_s4 = scalar_lea.hbm %s3521_s6, 512  ;;  %s2671_s28 = scalar_lea.hbm %s3666_s22, 4096 }
 0x40d   : > { %p2668_p10 = scmp.ne.s32.totalorder %s3521_s6, %s2667_s4  ;;  %p2672_p13 = scmp.lt.u32.totalorder %s3521_s6, %s3666_s22 }
 0x40e   : > { %p2673_p4 = scmp.lt.u32.totalorder %s2671_s28, %s2667_s4  ;;  %p2675_p7 = scmp.lt.u32.totalorder %s2667_s4, %s3521_s6 }
 0x40f   : > { %p2669_p8 = pnand %p2668_p10, %p3667_p5 }
 0x410   : > { %p2674_p3 = por %p2673_p4, %p2672_p13 }
 0x411   : > { %p2670_p11 = pneg %p2669_p8 }
 0x412   : > { %p2676_p9 = por %p2675_p7, %p2674_p3 }
 0x414   : > { %p2677_p12 = pnand %p2676_p9, %p2670_p11 }
 0x416   : > { %2680 = shalt.err (!%p2677_p12)
}
 0x417   : > { %s2791_s20 = smov 4  }
 0x418   : > { %2412 = dma.vmem_to_hbm [thread:$0]  (%p3667_p5), %s3523_s26, 512, %s3521_s6, %s1921_s30, %s2787_s27, %s2787_s27, %s2791_s20  }
 0x419 PF: > { %s3668_s1 = sld [smem:[#allocation12_spill]]  ;;  %s3669_s25 = sld [smem:[#allocation16_spill]] }
 0x41a   : > { %p2426_p1 = scmp.ge.s32.totalorder %s2779_s19, 2 }
 0x41f   : > { %s1952_s21 = sand.u32 1, %s3668_s1   ;;  %p3670_p6 = scmp.ne.s32.totalorder %s3669_s25, 0 }
 0x420   : > { %s1953_s29 = scalar_lea.sflag [#allocation5], %s1952_s21 }
 0x421   : > { %p2422_p0 = pnand %p2426_p1, %p3670_p6 }
 0x423   : > { %2734 = dma.done.wait (!%p2422_p0), %s1953_s29, 512  }
 0x424   : > { %2736 = vsyncadd (!%p2422_p0), %s1953_s29, 4294966784  ;;  %s28_s19 = sadd.s32 1, %s2779_s19   ;;  %s3671_s17 = smov %s3010_s12 }
 0x425   : > { %p25_p2 = scmp.ge.s32.totalorder %s28_s19, 10   ;;  %s3672_s15 = sld [smem:[#allocation13_spill]] }
 0x426   : > { %s3673_s27 = sld [smem:[#allocation14_spill]]  ;;  %s3674_s26 = sld [smem:[#allocation17_spill]] }
 0x427   : > { %s3675_s30 = smov %s2743_s10  ;;  %s3676_s10 = smov %s2747_s11 }
 0x428   : > { %s3677_s11 = smov %s3026_s9  ;;  %s3678_s12 = smov %s2755_s13 }
 0x429   : > { %s3679_s13 = smov %s2759_s14  ;;  %s3680_s14 = smov %s3671_s17 }
 0x42a   : > { %s3681_s16 = smov %s2775_s18  ;;  %27 = sbr.rel (!%p25_p2) target bundleno = 19 (0x13), region = 128 }
 0x42c   : > { %s3682_s17 = smov %s3673_s27  ;;  %s3683_s18 = smov %s3674_s26 }
 0x431   :  { %1958 = vsyncpa [#allocation4], 1 }
 0x432   :  { %1960 = vsyncpa [#allocation4 + $0x1], 1 }
 0x433   :  { %1961 = vsyncpa [#allocation7], 1 }
 0x434   :  { %1963 = vsyncpa [#allocation7 + $0x1], 1 }
 0x435   :  { %1964 = vsyncpa [#allocation5], 1 }
 0x436   :  { %1966 = vsyncpa [#allocation5 + $0x1], 1 }

</bundles_post_ra>
